<compile_context>
chip_gen: v5e
topology: v5e:2x2
jax: 0.10.0
libtpu: 0.0.40
codegen_flags: <defaults>
</compile_context>

<pallas_src>
import functools
import math

import jax
import jax.numpy as jnp
from jax.experimental import pallas as pl
from jax.experimental.pallas import tpu as pltpu


def _mha_pool_kernel(x_ref, wqk_ref, bqk_ref, wv_ref, bv_ref, e_ref, o_ref, *,
                     num_queries, seq_len):
    # Per-grid-step block shapes:
    #   x_ref    : (TB, Lp, Dp)    activations for TB batch rows (padded L, D)
    #   wqk_ref  : (Dp, Q*H)       query folded into W_k (scale folded in)
    #   bqk_ref  : (1, Q*H)        query folded into b_k (scale folded in), f32
    #   wv_ref   : (Dp, Dp)        W_v^T (padded)
    #   bv_ref   : (1, Dp)         f32
    #   e_ref    : (Q*H, Q*Dp)     0/1 head/query expansion matrix
    #   o_ref    : (TB, Q, Dp)     pooled (pre-output-projection) result
    TB, Lp, Dp = x_ref.shape
    HQ = wqk_ref.shape[-1]
    Q = num_queries

    # Flatten to one big (TB*Lp, Dp) tile (free: Lp is sublane-aligned).
    x = x_ref[...].reshape(TB * Lp, Dp)

    # Attention scores with the query / scale / b_k pre-folded:
    #   s[(b,l), q*H+h] = scale * <query[h,q,:], k[b,l,h,:]>
    s = jnp.dot(x, wqk_ref[...], preferred_element_type=jnp.float32) + bqk_ref[...]
    # V projection (the dominant matmul): native-dtype operands, f32 accumulate.
    v = jnp.dot(x, wv_ref[...], preferred_element_type=jnp.float32) + bv_ref[...]

    # Softmax over the sequence axis, per (batch, query, head), in f32.
    s = s.reshape(TB, Lp, HQ)
    if seq_len != Lp:
        # Mask padded sequence rows (static: only emitted when L was padded).
        li = jax.lax.broadcasted_iota(jnp.int32, (TB, Lp, HQ), 1)
        s = jnp.where(li < seq_len, s, jnp.float32(-1e30))
    s = s - jnp.max(s, axis=1, keepdims=True)
    p = jnp.exp(s)
    denom = jnp.sum(p, axis=1, keepdims=True)
    # Exact reciprocal: the denominator is only TB*Q*H values, so this is free
    # and avoids the approx-recip error on the whole pooled output.
    p = p * pl.reciprocal(denom, approx=False)

    # Expand each (query, head) weight across that head's Dh output lanes with a
    # single small matmul in the matmul dtype (0/1 matrix -> exact in bf16).
    pexp = jnp.dot(p.reshape(TB * Lp, HQ).astype(x_ref.dtype), e_ref[...],
                   preferred_element_type=jnp.float32)        # (TB*Lp, Q*Dp)
    pexp = pexp.reshape(TB, Lp, Q * Dp)
    v = v.reshape(TB, Lp, Dp)

    # 'b h l d -> b l (h d)' recombination + reduction over L.  Lane-aligned
    # static slices (multiples of Dp = multiple of 128) — no relayouts.
    pooled = [jnp.sum(pexp[:, :, qi * Dp:(qi + 1) * Dp] * v, axis=1)
              for qi in range(Q)]                              # Q x (TB, Dp)
    o = pooled[0] if Q == 1 else jnp.concatenate(pooled, axis=-1)
    o_ref[...] = o.reshape(TB, Q, Dp).astype(o_ref.dtype)


def multi_head_attention_pool(query, x, w_k, b_k, w_v, b_v, w_out, b_out,
                              num_heads, *, block_b=None, compute_dtype=None):
    """query: (1, H, Q, Dh), x: (B, L, D), PyTorch (out, in) weights. -> (B, Q, D)."""
    B, L, D = x.shape
    _, H, Q, Dh = query.shape
    assert H == num_heads and H * Dh == D

    cdt = jnp.dtype(compute_dtype) if compute_dtype is not None else jnp.dtype(x.dtype)
    itemsize = cdt.itemsize
    HQ = Q * H
    scale = 1.0 / math.sqrt(Dh)

    # --- One-time precompute (plain JAX, f32) -----------------------------------
    qf = query[0].astype(jnp.float32)                          # (H, Q, Dh)
    wk_heads = w_k.astype(jnp.float32).T.reshape(D, H, Dh)     # F.linear: x @ W.T
    wqk = (jnp.einsum("dhe,hqe->dqh", wk_heads, qf) * scale).reshape(D, HQ)
    bqk = (jnp.einsum("he,hqe->qh", b_k.astype(jnp.float32).reshape(H, Dh), qf)
           * scale).reshape(1, HQ)

    # --- Lane/sublane-friendly padding (free reshapes, lane-dense stores) -------
    sub = 32 // itemsize                      # sublane pack: 8 f32 / 16 bf16
    Lp = sub * pl.cdiv(L, sub)
    Dp = 128 * pl.cdiv(D, 128)

    x_p = x
    if (Lp, Dp) != (L, D):
        x_p = jnp.pad(x, ((0, 0), (0, Lp - L), (0, Dp - D)))
    x_p = x_p.astype(cdt)
    wqk_p = jnp.pad(wqk, ((0, Dp - D), (0, 0))).astype(cdt)
    bqk_p = bqk.astype(jnp.float32)
    wv_p = jnp.pad(w_v.astype(jnp.float32).T, ((0, Dp - D), (0, Dp - D))).astype(cdt)
    bv_p = jnp.pad(b_v.reshape(1, D), ((0, 0), (0, Dp - D))).astype(jnp.float32)

    # Head/query expansion matrix: E[q*H+h, q*Dp + h*Dh + d] = 1 (0 elsewhere).
    r = jnp.arange(HQ)[:, None]
    c = jnp.arange(Q * Dp)[None, :]
    cq, cm = c // Dp, c % Dp
    e_mat = ((cq == r // H) & (cm < D) & (cm // Dh == r % H)).astype(cdt)

    # --- Generation-aware VMEM budget & batch blocking ---------------------------
    try:
        vmem_cap = int(pltpu.get_tpu_info().vmem_capacity_bytes)
    except Exception:
        vmem_cap = 64 * 1024 * 1024           # conservative (v7x-sized) fallback
    vmem_limit = int(vmem_cap * 0.75)         # ~96 MiB on v5e/v6e, ~48 MiB on v7x

    if block_b is None:
        per_row = (2 * Dp * itemsize          # x tile (double-buffered)
                   + 4 * Dp                   # f32 V projection
                   + 2 * 4 * Q * Dp           # f32 expanded weights + product temp
                   + 2 * 4 * HQ)              # f32 scores + softmax
        weights = itemsize * (Dp * HQ + Dp * Dp + HQ * Q * Dp) + 4 * (HQ + Dp)
        budget = int(vmem_limit * 0.7) - weights
        # TODO(synk): L-tiled (flash-style) second grid axis for very long L / wide
        # D where even a single (Lp, Dp) slab exceeds the per-step VMEM budget.
        rows = max(Lp, budget // per_row)
        block_b = max(1, min(B, rows // Lp))
        if B >= 2:
            # >=2 grid steps: both v7x TensorCores get work under
            # dimension_semantics=('parallel',) and DMA fill/drain is overlapped.
            block_b = min(block_b, pl.cdiv(B, 2))
    TB = int(block_b)

    kernel = functools.partial(_mha_pool_kernel, num_queries=Q, seq_len=L)

    def _const_spec(shape, single_buffer):
        idx = lambda b: (0,) * len(shape)
        if single_buffer:
            # Grid-invariant weights: fetched once, a second buffer is pure waste.
            return pl.BlockSpec(shape, idx, pipeline_mode=pl.Buffered(1))
        return pl.BlockSpec(shape, idx)

    def _call(single_buffer):
        return pl.pallas_call(
            kernel,
            out_shape=jax.ShapeDtypeStruct((B, Q, Dp), cdt),
            grid=(pl.cdiv(B, TB),),
            in_specs=[
                pl.BlockSpec((TB, Lp, Dp), lambda b: (b, 0, 0)),   # x
                _const_spec((Dp, HQ), single_buffer),              # Wqk (query folded)
                _const_spec((1, HQ), single_buffer),               # bqk
                _const_spec((Dp, Dp), single_buffer),              # W_v^T
                _const_spec((1, Dp), single_buffer),               # b_v
                _const_spec((HQ, Q * Dp), single_buffer),          # expansion matrix
            ],
            out_specs=pl.BlockSpec((TB, Q, Dp), lambda b: (b, 0, 0)),
            compiler_params=pltpu.CompilerParams(
                dimension_semantics=("parallel",),
                vmem_limit_bytes=vmem_limit),
        )(x_p, wqk_p, bqk_p, wv_p, bv_p, e_mat)

    try:
        pooled = _call(single_buffer=True)
    except Exception:
        # Fallback if this JAX build rejects single-buffered constant blocks.
        pooled = _call(single_buffer=False)

    # --- Hoisted output projection: one (B*Q, D) x (D, D) matmul for the whole batch.
    pooled = pooled[..., :D].reshape(B * Q, D)
    out = (jnp.dot(pooled.astype(cdt), w_out.T.astype(cdt),
                   preferred_element_type=jnp.float32)
           + b_out.astype(jnp.float32).reshape(1, D))
    return out.reshape(B, Q, D).astype(x.dtype)


def _reference(query, x, w_k, b_k, w_v, b_v, w_out, b_out, num_heads):
    B, L, D = x.shape
    _, H, Q, Dh = query.shape
    k = (x @ w_k.T + b_k).reshape(B, L, H, Dh).transpose(0, 2, 1, 3)
    v = (x @ w_v.T + b_v).reshape(B, L, H, Dh).transpose(0, 2, 1, 3)
    q = jnp.broadcast_to(query, (B, H, Q, Dh))
    s = jnp.einsum("bhqd,bhkd->bhqk", q, k) / math.sqrt(Dh)
    p = jax.nn.softmax(s, axis=-1)
    o = jnp.einsum("bhqk,bhkd->bhqd", p, v)
    o = o.transpose(0, 2, 1, 3).reshape(B, Q, D)
    return o @ w_out.T + b_out


if __name__ == "__main__":
    # Make the f32 reference matmuls exact so the comparison is meaningful.
    jax.config.update("jax_default_matmul_precision", "highest")

    def run_case(key, B, L, D, num_heads, num_queries):
        Dh = D // num_heads
        k_q, k_wk, k_wv, k_wo, k_bk, k_bv, k_bo, k_x = jax.random.split(key, 8)
        query = 0.02 * jax.random.truncated_normal(
            k_q, -2.0, 2.0, (1, num_heads, num_queries, Dh), jnp.float32)
        bound = math.sqrt(6.0 / (D + D))
        w_k = jax.random.uniform(k_wk, (D, D), jnp.float32, -bound, bound)
        w_v = jax.random.uniform(k_wv, (D, D), jnp.float32, -bound, bound)
        w_out = jax.random.uniform(k_wo, (D, D), jnp.float32, -bound, bound)
        b_k = 0.1 * jax.random.normal(k_bk, (D,), jnp.float32)
        b_v = 0.1 * jax.random.normal(k_bv, (D,), jnp.float32)
        b_out = 0.1 * jax.random.normal(k_bo, (D,), jnp.float32)
        x = jax.random.normal(k_x, (B, L, D), jnp.float32)

        out = multi_head_attention_pool(query, x, w_k, b_k, w_v, b_v,
                                        w_out, b_out, num_heads)
        out = jax.block_until_ready(out)
        ref = _reference(query, x, w_k, b_k, w_v, b_v, w_out, b_out, num_heads)
        assert out.shape == (B, num_queries, D)
        err = jnp.max(jnp.abs(out - ref))
        assert jnp.allclose(out, ref, atol=2e-3, rtol=2e-3), f"max abs err {err}"

    key = jax.random.PRNGKey(0)
    k1, k2 = jax.random.split(key)
    # Aligned small case (typical pooling use: single query).
    run_case(k1, B=2, L=16, D=32, num_heads=4, num_queries=1)
    # Unaligned case: exercises L/D padding, sequence masking and Q > 1.
    run_case(k2, B=2, L=12, D=64, num_heads=4, num_queries=2)
    print("KERNEL_OK")
</pallas_src>

<mosaic_0001>
module attributes {stable_mosaic.version = 11 : i64} {
  func.func @_mha_pool_kernel(%arg0: i32, %arg1: memref<1x16x128xf32, #tpu.memory_space<vmem>>, %arg2: memref<128x4xf32, #tpu.memory_space<vmem>>, %arg3: memref<1x4xf32, #tpu.memory_space<vmem>>, %arg4: memref<128x128xf32, #tpu.memory_space<vmem>>, %arg5: memref<1x128xf32, #tpu.memory_space<vmem>>, %arg6: memref<4x128xf32, #tpu.memory_space<vmem>>, %arg7: memref<1x1x128xf32, #tpu.memory_space<vmem>>) attributes {dimension_semantics = [#tpu.dimension_semantics<parallel>], iteration_bounds = array<i64: 2>, scalar_prefetch = 0 : i64, scratch_operands = 0 : i64, tpu.core_type = #tpu.core_type<tc>, window_params = [{transform_indices = @transform_0, window_bounds = array<i64: 1, 16, 128>}, {pipeline_mode = #tpu.pipeline_mode<synchronous>, transform_indices = @transform_1, window_bounds = array<i64: 128, 4>}, {pipeline_mode = #tpu.pipeline_mode<synchronous>, transform_indices = @transform_2, window_bounds = array<i64: 1, 4>}, {pipeline_mode = #tpu.pipeline_mode<synchronous>, transform_indices = @transform_3, window_bounds = array<i64: 128, 128>}, {pipeline_mode = #tpu.pipeline_mode<synchronous>, transform_indices = @transform_4, window_bounds = array<i64: 1, 128>}, {pipeline_mode = #tpu.pipeline_mode<synchronous>, transform_indices = @transform_5, window_bounds = array<i64: 4, 128>}, {transform_indices = @transform_6, window_bounds = array<i64: 1, 1, 128>}]} {
    %c0 = arith.constant 0 : index
    %c0_0 = arith.constant 0 : index
    %c0_1 = arith.constant 0 : index
    %0 = vector.load %arg1[%c0, %c0_0, %c0_1] : memref<1x16x128xf32, #tpu.memory_space<vmem>>, vector<1x16x128xf32>
    %1 = vector.shape_cast %0 : vector<1x16x128xf32> to vector<16x128xf32>
    %c0_2 = arith.constant 0 : index
    %c0_3 = arith.constant 0 : index
    %2 = vector.load %arg2[%c0_2, %c0_3] : memref<128x4xf32, #tpu.memory_space<vmem>>, vector<128x4xf32>
    %cst = arith.constant dense<0.000000e+00> : vector<16x4xf32>
    %3 = tpu.matmul %1, %2, %cst {dimension_numbers = #tpu.dot_dimension_numbers<[1], [0], [0], [1], [0, 0, 1, 1], [], []>, precision = #tpu.contract_precision<fp32>} : vector<16x128xf32>, vector<128x4xf32>, vector<16x4xf32> -> vector<16x4xf32>
    %c0_4 = arith.constant 0 : index
    %c0_5 = arith.constant 0 : index
    %4 = vector.load %arg3[%c0_4, %c0_5] : memref<1x4xf32, #tpu.memory_space<vmem>>, vector<1x4xf32>
    %5 = vector.broadcast %4 : vector<1x4xf32> to vector<16x4xf32>
    %6 = arith.addf %3, %5 : vector<16x4xf32>
    %c0_6 = arith.constant 0 : index
    %c0_7 = arith.constant 0 : index
    %7 = vector.load %arg4[%c0_6, %c0_7] : memref<128x128xf32, #tpu.memory_space<vmem>>, vector<128x128xf32>
    %cst_8 = arith.constant dense<0.000000e+00> : vector<16x128xf32>
    %8 = tpu.matmul %1, %7, %cst_8 {dimension_numbers = #tpu.dot_dimension_numbers<[1], [0], [0], [1], [0, 0, 1, 1], [], []>, precision = #tpu.contract_precision<fp32>} : vector<16x128xf32>, vector<128x128xf32>, vector<16x128xf32> -> vector<16x128xf32>
    %c0_9 = arith.constant 0 : index
    %c0_10 = arith.constant 0 : index
    %9 = vector.load %arg5[%c0_9, %c0_10] : memref<1x128xf32, #tpu.memory_space<vmem>>, vector<1x128xf32>
    %10 = vector.broadcast %9 : vector<1x128xf32> to vector<16x128xf32>
    %11 = arith.addf %8, %10 : vector<16x128xf32>
    %12 = vector.shape_cast %6 : vector<16x4xf32> to vector<1x16x4xf32>
    %cst_11 = arith.constant dense<0xFF800000> : vector<1x4xf32>
    %13 = vector.multi_reduction <maximumf>, %12, %cst_11 [1] : vector<1x16x4xf32> to vector<1x4xf32>
    %14 = vector.shape_cast %13 : vector<1x4xf32> to vector<1x1x4xf32>
    %15 = vector.broadcast %14 : vector<1x1x4xf32> to vector<1x16x4xf32>
    %16 = arith.subf %12, %15 : vector<1x16x4xf32>
    %17 = math.exp %16 : vector<1x16x4xf32>
    %cst_12 = arith.constant dense<0.000000e+00> : vector<1x4xf32>
    %18 = vector.multi_reduction <add>, %17, %cst_12 [1] : vector<1x16x4xf32> to vector<1x4xf32>
    %19 = vector.shape_cast %18 : vector<1x4xf32> to vector<1x1x4xf32>
    %20 = tpu.reciprocal %19 : vector<1x1x4xf32> -> vector<1x1x4xf32>
    %21 = vector.broadcast %20 : vector<1x1x4xf32> to vector<1x16x4xf32>
    %22 = arith.mulf %17, %21 : vector<1x16x4xf32>
    %23 = vector.shape_cast %22 : vector<1x16x4xf32> to vector<16x4xf32>
    %c0_13 = arith.constant 0 : index
    %c0_14 = arith.constant 0 : index
    %24 = vector.load %arg6[%c0_13, %c0_14] : memref<4x128xf32, #tpu.memory_space<vmem>>, vector<4x128xf32>
    %cst_15 = arith.constant dense<0.000000e+00> : vector<16x128xf32>
    %25 = tpu.matmul %23, %24, %cst_15 {dimension_numbers = #tpu.dot_dimension_numbers<[1], [0], [0], [1], [0, 0, 1, 1], [], []>, precision = #tpu.contract_precision<fp32>} : vector<16x4xf32>, vector<4x128xf32>, vector<16x128xf32> -> vector<16x128xf32>
    %26 = vector.shape_cast %25 : vector<16x128xf32> to vector<1x16x128xf32>
    %27 = vector.shape_cast %11 : vector<16x128xf32> to vector<1x16x128xf32>
    %28 = arith.mulf %26, %27 : vector<1x16x128xf32>
    %cst_16 = arith.constant dense<0.000000e+00> : vector<1x128xf32>
    %29 = vector.multi_reduction <add>, %28, %cst_16 [1] : vector<1x16x128xf32> to vector<1x128xf32>
    %30 = vector.shape_cast %29 : vector<1x128xf32> to vector<1x1x128xf32>
    %c0_17 = arith.constant 0 : index
    %c0_18 = arith.constant 0 : index
    %c0_19 = arith.constant 0 : index
    %31 = vector.load %arg7[%c0_17, %c0_18, %c0_19] : memref<1x1x128xf32, #tpu.memory_space<vmem>>, vector<1x1x128xf32>
    tpu.vector_store %arg7[%c0_17, %c0_18, %c0_19], %30 {strides = array<i32>} : memref<1x1x128xf32, #tpu.memory_space<vmem>>, vector<1x1x128xf32>,
    return
  }
  func.func @transform_0(%arg0: i32) -> (i32, i32, i32) {
    %c0_i32 = arith.constant 0 : i32
    %c0_i32_0 = arith.constant 0 : i32
    %c0_i32_1 = arith.constant 0 : i32
    return %arg0, %c0_i32, %c0_i32_0 : i32, i32, i32
  }
  func.func @transform_1(%arg0: i32) -> (i32, i32) {
    %c0_i32 = arith.constant 0 : i32
    %c0_i32_0 = arith.constant 0 : i32
    %c0_i32_1 = arith.constant 0 : i32
    return %c0_i32, %c0_i32_0 : i32, i32
  }
  func.func @transform_2(%arg0: i32) -> (i32, i32) {
    %c0_i32 = arith.constant 0 : i32
    %c0_i32_0 = arith.constant 0 : i32
    %c0_i32_1 = arith.constant 0 : i32
    return %c0_i32, %c0_i32_0 : i32, i32
  }
  func.func @transform_3(%arg0: i32) -> (i32, i32) {
    %c0_i32 = arith.constant 0 : i32
    %c0_i32_0 = arith.constant 0 : i32
    %c0_i32_1 = arith.constant 0 : i32
    return %c0_i32, %c0_i32_0 : i32, i32
  }
  func.func @transform_4(%arg0: i32) -> (i32, i32) {
    %c0_i32 = arith.constant 0 : i32
    %c0_i32_0 = arith.constant 0 : i32
    %c0_i32_1 = arith.constant 0 : i32
    return %c0_i32, %c0_i32_0 : i32, i32
  }
  func.func @transform_5(%arg0: i32) -> (i32, i32) {
    %c0_i32 = arith.constant 0 : i32
    %c0_i32_0 = arith.constant 0 : i32
    %c0_i32_1 = arith.constant 0 : i32
    return %c0_i32, %c0_i32_0 : i32, i32
  }
  func.func @transform_6(%arg0: i32) -> (i32, i32, i32) {
    %c0_i32 = arith.constant 0 : i32
    %c0_i32_0 = arith.constant 0 : i32
    %c0_i32_1 = arith.constant 0 : i32
    return %arg0, %c0_i32, %c0_i32_0 : i32, i32, i32
  }
}

module attributes {stable_mosaic.version = 11 : i64} {
  func.func @_mha_pool_kernel(%arg0: i32, %arg1: memref<1x16x128xf32, #tpu.memory_space<vmem>>, %arg2: memref<128x4xf32, #tpu.memory_space<vmem>>, %arg3: memref<1x4xf32, #tpu.memory_space<vmem>>, %arg4: memref<128x128xf32, #tpu.memory_space<vmem>>, %arg5: memref<1x128xf32, #tpu.memory_space<vmem>>, %arg6: memref<4x128xf32, #tpu.memory_space<vmem>>, %arg7: memref<1x1x128xf32, #tpu.memory_space<vmem>>) attributes {dimension_semantics = [#tpu.dimension_semantics<parallel>], iteration_bounds = array<i64: 2>, scalar_prefetch = 0 : i64, scratch_operands = 0 : i64, tpu.core_type = #tpu.core_type<tc>, window_params = [{transform_indices = @transform_0, window_bounds = array<i64: 1, 16, 128>}, {pipeline_mode = #tpu.pipeline_mode<synchronous>, transform_indices = @transform_1, window_bounds = array<i64: 128, 4>}, {pipeline_mode = #tpu.pipeline_mode<synchronous>, transform_indices = @transform_2, window_bounds = array<i64: 1, 4>}, {pipeline_mode = #tpu.pipeline_mode<synchronous>, transform_indices = @transform_3, window_bounds = array<i64: 128, 128>}, {pipeline_mode = #tpu.pipeline_mode<synchronous>, transform_indices = @transform_4, window_bounds = array<i64: 1, 128>}, {pipeline_mode = #tpu.pipeline_mode<synchronous>, transform_indices = @transform_5, window_bounds = array<i64: 4, 128>}, {transform_indices = @transform_6, window_bounds = array<i64: 1, 1, 128>}]} {
    %c0 = arith.constant 0 : index
    %c0_0 = arith.constant 0 : index
    %c0_1 = arith.constant 0 : index
    %0 = vector.load %arg1[%c0, %c0_0, %c0_1] : memref<1x16x128xf32, #tpu.memory_space<vmem>>, vector<1x16x128xf32>
    %1 = vector.shape_cast %0 : vector<1x16x128xf32> to vector<16x128xf32>
    %c0_2 = arith.constant 0 : index
    %c0_3 = arith.constant 0 : index
    %2 = vector.load %arg2[%c0_2, %c0_3] : memref<128x4xf32, #tpu.memory_space<vmem>>, vector<128x4xf32>
    %cst = arith.constant dense<0.000000e+00> : vector<16x4xf32>
    %3 = tpu.matmul %1, %2, %cst {dimension_numbers = #tpu.dot_dimension_numbers<[1], [0], [0], [1], [0, 0, 1, 1], [], []>, precision = #tpu.contract_precision<fp32>} : vector<16x128xf32>, vector<128x4xf32>, vector<16x4xf32> -> vector<16x4xf32>
    %c0_4 = arith.constant 0 : index
    %c0_5 = arith.constant 0 : index
    %4 = vector.load %arg3[%c0_4, %c0_5] : memref<1x4xf32, #tpu.memory_space<vmem>>, vector<1x4xf32>
    %5 = vector.broadcast %4 : vector<1x4xf32> to vector<16x4xf32>
    %6 = arith.addf %3, %5 : vector<16x4xf32>
    %c0_6 = arith.constant 0 : index
    %c0_7 = arith.constant 0 : index
    %7 = vector.load %arg4[%c0_6, %c0_7] : memref<128x128xf32, #tpu.memory_space<vmem>>, vector<128x128xf32>
    %cst_8 = arith.constant dense<0.000000e+00> : vector<16x128xf32>
    %8 = tpu.matmul %1, %7, %cst_8 {dimension_numbers = #tpu.dot_dimension_numbers<[1], [0], [0], [1], [0, 0, 1, 1], [], []>, precision = #tpu.contract_precision<fp32>} : vector<16x128xf32>, vector<128x128xf32>, vector<16x128xf32> -> vector<16x128xf32>
    %c0_9 = arith.constant 0 : index
    %c0_10 = arith.constant 0 : index
    %9 = vector.load %arg5[%c0_9, %c0_10] : memref<1x128xf32, #tpu.memory_space<vmem>>, vector<1x128xf32>
    %10 = vector.broadcast %9 : vector<1x128xf32> to vector<16x128xf32>
    %11 = arith.addf %8, %10 : vector<16x128xf32>
    %12 = vector.shape_cast %6 : vector<16x4xf32> to vector<1x16x4xf32>
    %cst_11 = arith.constant dense<0xFF800000> : vector<1x4xf32>
    %13 = vector.multi_reduction <maximumf>, %12, %cst_11 [1] : vector<1x16x4xf32> to vector<1x4xf32>
    %14 = vector.shape_cast %13 : vector<1x4xf32> to vector<1x1x4xf32>
    %15 = vector.broadcast %14 : vector<1x1x4xf32> to vector<1x16x4xf32>
    %16 = arith.subf %12, %15 : vector<1x16x4xf32>
    %17 = math.exp %16 : vector<1x16x4xf32>
    %cst_12 = arith.constant dense<0.000000e+00> : vector<1x4xf32>
    %18 = vector.multi_reduction <add>, %17, %cst_12 [1] : vector<1x16x4xf32> to vector<1x4xf32>
    %19 = vector.shape_cast %18 : vector<1x4xf32> to vector<1x1x4xf32>
    %20 = tpu.reciprocal %19 : vector<1x1x4xf32> -> vector<1x1x4xf32>
    %21 = vector.broadcast %20 : vector<1x1x4xf32> to vector<1x16x4xf32>
    %22 = arith.mulf %17, %21 : vector<1x16x4xf32>
    %23 = vector.shape_cast %22 : vector<1x16x4xf32> to vector<16x4xf32>
    %c0_13 = arith.constant 0 : index
    %c0_14 = arith.constant 0 : index
    %24 = vector.load %arg6[%c0_13, %c0_14] : memref<4x128xf32, #tpu.memory_space<vmem>>, vector<4x128xf32>
    %cst_15 = arith.constant dense<0.000000e+00> : vector<16x128xf32>
    %25 = tpu.matmul %23, %24, %cst_15 {dimension_numbers = #tpu.dot_dimension_numbers<[1], [0], [0], [1], [0, 0, 1, 1], [], []>, precision = #tpu.contract_precision<fp32>} : vector<16x4xf32>, vector<4x128xf32>, vector<16x128xf32> -> vector<16x128xf32>
    %26 = vector.shape_cast %25 : vector<16x128xf32> to vector<1x16x128xf32>
    %27 = vector.shape_cast %11 : vector<16x128xf32> to vector<1x16x128xf32>
    %28 = arith.mulf %26, %27 : vector<1x16x128xf32>
    %cst_16 = arith.constant dense<0.000000e+00> : vector<1x128xf32>
    %29 = vector.multi_reduction <add>, %28, %cst_16 [1] : vector<1x16x128xf32> to vector<1x128xf32>
    %30 = vector.shape_cast %29 : vector<1x128xf32> to vector<1x1x128xf32>
    %c0_17 = arith.constant 0 : index
    %c0_18 = arith.constant 0 : index
    %c0_19 = arith.constant 0 : index
    %31 = vector.load %arg7[%c0_17, %c0_18, %c0_19] : memref<1x1x128xf32, #tpu.memory_space<vmem>>, vector<1x1x128xf32>
    tpu.vector_store %arg7[%c0_17, %c0_18, %c0_19], %30 {strides = array<i32>} : memref<1x1x128xf32, #tpu.memory_space<vmem>>, vector<1x1x128xf32>,
    return
  }
  func.func @transform_0(%arg0: i32) -> (i32, i32, i32) {
    %c0_i32 = arith.constant 0 : i32
    %c0_i32_0 = arith.constant 0 : i32
    %c0_i32_1 = arith.constant 0 : i32
    return %arg0, %c0_i32, %c0_i32_0 : i32, i32, i32
  }
  func.func @transform_1(%arg0: i32) -> (i32, i32) {
    %c0_i32 = arith.constant 0 : i32
    %c0_i32_0 = arith.constant 0 : i32
    %c0_i32_1 = arith.constant 0 : i32
    return %c0_i32, %c0_i32_0 : i32, i32
  }
  func.func @transform_2(%arg0: i32) -> (i32, i32) {
    %c0_i32 = arith.constant 0 : i32
    %c0_i32_0 = arith.constant 0 : i32
    %c0_i32_1 = arith.constant 0 : i32
    return %c0_i32, %c0_i32_0 : i32, i32
  }
  func.func @transform_3(%arg0: i32) -> (i32, i32) {
    %c0_i32 = arith.constant 0 : i32
    %c0_i32_0 = arith.constant 0 : i32
    %c0_i32_1 = arith.constant 0 : i32
    return %c0_i32, %c0_i32_0 : i32, i32
  }
  func.func @transform_4(%arg0: i32) -> (i32, i32) {
    %c0_i32 = arith.constant 0 : i32
    %c0_i32_0 = arith.constant 0 : i32
    %c0_i32_1 = arith.constant 0 : i32
    return %c0_i32, %c0_i32_0 : i32, i32
  }
  func.func @transform_5(%arg0: i32) -> (i32, i32) {
    %c0_i32 = arith.constant 0 : i32
    %c0_i32_0 = arith.constant 0 : i32
    %c0_i32_1 = arith.constant 0 : i32
    return %c0_i32, %c0_i32_0 : i32, i32
  }
  func.func @transform_6(%arg0: i32) -> (i32, i32, i32) {
    %c0_i32 = arith.constant 0 : i32
    %c0_i32_0 = arith.constant 0 : i32
    %c0_i32_1 = arith.constant 0 : i32
    return %arg0, %c0_i32, %c0_i32_0 : i32, i32, i32
  }
}

</mosaic_0001>

<bundles_post_ra>
// kernel: tpu_custom_call.1
= control target key start
LH: loop header
LB: loop body
LE: loop exit
PB: predicated region body
PF: predicated region fallthrough
CT: control target
= control target key end

     0   :  { %11 = vsyncpa [#allocation3], 0  ;;  %s2352_s0 = inlined_call_operand.hbm [shape: f32[2,16,128], index: 0, kind: input, shape index: {}]   ;;  %s2353_s1 = inlined_call_operand.vmem [shape: f32[128,4], index: 1, kind: input, shape index: {}]   ;;  %s2354_s2 = inlined_call_operand.vmem [shape: f32[1,4], index: 2, kind: input, shape index: {}]   ;;  %s2355_s3 = inlined_call_operand.vmem [shape: f32[128,128], index: 3, kind: input, shape index: {}]   ;;  %s2356_s4 = inlined_call_operand.vmem [shape: f32[1,128], index: 4, kind: input, shape index: {}]   ;;  %s2357_s5 = inlined_call_operand.vmem [shape: f32[4,128], index: 5, kind: input, shape index: {}]   ;;  %s2358_s6 = inlined_call_operand.hbm [shape: f32[2,1,128], index: 6, kind: output, shape index: {}]  }
   0x1   :  { %13 = vsyncpa [#allocation3 + $0x1], 0 }
   0x2   :  { %14 = vsyncpa [#allocation4], 0 }
   0x3   :  { %16 = vsyncpa [#allocation4 + $0x1], 0  ;;  %s1579_s21 = smov 0   ;;  %s1581_s22 = smov 0  }
   0x4   :  { %s1583_s23 = smov 0   ;;  %s1585_s24 = smov 0  }
   0x5 LB: > { %s1600_s25 = sadd.s32 4294967295, %s1540_s24   ;;  %s1375_s26 = sadd.s32 4294967294, %s1540_s24   ;;  %s1540_s24 = sphi %s1585_s24, %s2378_s24   ;;  %s1536_s23 = sphi %s1583_s23, %s2377_s23   ;;  %s1532_s22 = sphi %s1581_s22, %s2376_s22   ;;  %s1528_s21 = sphi %s1579_s21, %s2375_s21  }
   0x6   : > { %s1604_s27 = sadd.s32 1, %s1540_s24   ;;  %s29_s28 = sadd.s32 1, %s1536_s23 }
   0x7   : > { %s26_s29 = ssub.s32 %s1540_s24, %s1604_s27  ;;  %p36_p0 = scmp.ne.s32.totalorder %s1536_s23, %s1532_s22 }
   0x8   : > { %p27_p1 = scmp.eq.s32.totalorder %s26_s29, 0  ;;  %p37_p2 = scmp.eq.s32.totalorder %s1540_s24, 0 }
   0x9   : > { %p42_p3 = scmp.ne.s32.totalorder %s1532_s22, %s1528_s21  ;;  %p43_p4 = scmp.eq.s32.totalorder %s1600_s25, 0 }
   0xa   : > { %s1616_s30 = scalar_select %p27_p1, %s1536_s23, %s29_s28  }
   0xb   : > { %p1618_p5 = por %p37_p2, %p36_p0  ;;  %p1622_p6 = por %p43_p4, %p42_p3 }
   0xc   : > { %p171_p7 = scmp.eq.s32.totalorder %s1600_s25, 1  ;;  %p177_p8 = scmp.eq.s32.totalorder %s1375_s26, 1 }
   0xd   : > { %p1400_p10 = scmp.lt.s32.totalorder %s1540_s24, 2  ;;  %s212_s11 = sand.u32 1, %s1536_s23  }
   0xe   : > { %p1629_p11 = por %p171_p7, %p36_p0  ;;  %p1633_p12 = por %p177_p8, %p42_p3 }
   0xf   : > { %s1385_s12 = sshll.u32 %s1540_s24, 4  ;;  %s1378_s13 = sshll.u32 %s212_s11, 4 }
  0x10   : > { %s221_s16 = scalar_lea.hbm %s2352_s0, %s1385_s12  ;;  %s216_s18 = scalar_lea.vmem [#allocation2], %s1378_s13 }
  0x11   : > { %s222_s17 = sshll.u32 %s221_s16, 4  ;;  %s224_s19 = sshll.u32 %s216_s18, 4  ;;  %s223_s17 = int_to_ptr.hbm [resolvable:$true] %s222_s17  ;;  %s225_s19 = int_to_ptr.vmem [resolvable:$true] %s224_s19 }
  0x12   : > { %p1644_p13 = pnand %p1400_p10, %p1618_p5  ;;  %p1381_p0 = scmp.ge.s32.totalorder %s1540_s24, 1 }
  0x13   : > { %p232_p1 = scmp.lt.s32.totalorder %s1540_s24, 3  ;;  %s213_s26 = scalar_lea.sflag [#allocation3], %s212_s11 }
  0x14   : > { %s1444_s28 = sshra.s32 %s223_s17, 4  ;;  %p1448_p3 = pneg %p1644_p13  ;;  %s1445_s28 = int_to_ptr.hbm [resolvable:$true] %s1444_s28 }
  0x15   : > { %s1446_s29 = scalar_lea.hbm %s1445_s28, 16  ;;  %s1451_s7 = scalar_lea.hbm %s2352_s0, 32 }
  0x16   : > { %p1447_p2 = scmp.ne.s32.totalorder %s1445_s28, %s1446_s29  ;;  %p1452_p5 = scmp.lt.s32.totalorder %s1445_s28, %s2352_s0 }
  0x17   : > { %p1453_p8 = scmp.lt.s32.totalorder %s1451_s7, %s1446_s29 }
  0x18   : > { %p1449_p4 = pnand %p1448_p3, %p1447_p2 }
  0x19   : > { %p1454_p10 = por %p1453_p8, %p1452_p5 }
  0x1a   : > { %p1450_p7 = pneg %p1449_p4 }
  0x1c   : > { %p1455_p9 = pnand %p1454_p10, %p1450_p7 }
  0x1e   : > { %1458 = shalt.err (!%p1455_p9)
}
  0x1f   : > { %s1542_s11 = smov 128   ;;  %s1543_s16 = smov 8  }
  0x20   : > { %1395 = dma.hbm_to_vmem [thread:$0]  (!%p1644_p13), %s223_s17, 256, %s225_s19, %s213_s26, %s1542_s11, %s1542_s11, %s1543_s16  }
  0x21   : > { %p233_p2 = pnand %p1381_p0, %p232_p1 }
  0x22   : > { %s1665_s18 = sand.u32 (!%p233_p2), 1, %s1532_s22  }
  0x23   : > { %236 = sbr.rel (%p233_p2) target bundleno = 498 (0x1f2), region = 44  ;;  %s1382_s28 = sshll.u32 (!%p233_p2), %s1665_s18, 4 }
  0x24   : > { %s239_s29 = scalar_lea.sflag (!%p233_p2), [#allocation3], %s1665_s18  ;;  %s1669_s12 = scalar_lea.vmem (!%p233_p2), [#allocation2], %s1382_s28 }
  0x28   : > { %1519 = dma.done.wait (%p1622_p6), %s239_s29, 256  }
  0x29   : > { %1521 = vsyncadd (%p1622_p6), %s239_s29, 4294967040  ;;  %v288_v0 = vld [vmem:[%s2353_s1 + $0x78] sm:$0xff]  ;;  %v287_v1 = vld [vmem:[%s2353_s1 + $0x70] sm:$0xff]  ;;  %vm1057_vm0 = vcmask 31744   ;;  %vm1105_vm1 = vcmask 1043456   ;;  %s1305_s13 = scalar_lea.hbm %s2358_s6, %s1600_s25  ;;  %s270_s7 = scalar_lea.vmem [#allocation5], %s1665_s18 }
  0x2a   : > { %v286_v2 = vld [vmem:[%s2353_s1 + $0x68] sm:$0xff]  ;;  %v1684_v3 = vand.u32 4294901760, %v288_v0  ;;  %v1686_v4 = vand.u32 4294901760, %v287_v1  ;;  %v285_v6 = vld [vmem:[%s2353_s1 + $0x60] sm:$0xff]  ;;  %v284_v7 = vld [vmem:[%s2353_s1 + $0x58] sm:$0xff]  ;;  %s1309_s8 = sshll.u32 %s1305_s13, 4  ;;  %s1310_s8 = int_to_ptr.hbm [resolvable:$true] %s1309_s8 }
  0x2b   : > { %v1688_v5 = vand.u32 4294901760, %v286_v2  ;;  %v283_v8 = vld [vmem:[%s2353_s1 + $0x50] sm:$0xff]  ;;  %v1699_v9 = vand.u32 4294901760, %v285_v6  ;;  %v1701_v10 = vand.u32 4294901760, %v284_v7  ;;  %v282_v12 = vld [vmem:[%s2353_s1 + $0x48] sm:$0xff]  ;;  %v281_v13 = vld [vmem:[%s2353_s1 + $0x40] sm:$0xff] }
  0x2c   : > { %v1703_v11 = vand.u32 4294901760, %v283_v8  ;;  %294 = vmatpush.msra.mxu0 %v1684_v3  ;;  %v1713_v14 = vsub.f32 %v288_v0, %v1684_v3  ;;  %v1716_v15 = vsub.f32 %v287_v1, %v1686_v4  ;;  %v1718_v16 = vand.u32 4294901760, %v282_v12  ;;  %v280_v18 = vld [vmem:[%s2353_s1 + $0x38] sm:$0xff]  ;;  %507 = vmatpush.msra.mxu3 %v1684_v3  ;;  %v279_v25 = vld [vmem:[%s2353_s1 + $0x30] sm:$0xff]  ;;  %v278_v33 = vld [vmem:[%s2353_s1 + $0x28] sm:$0xff]  ;;  %s1297_s14 = scalar_lea.sflag [#allocation4], %s1665_s18 }
  0x2d   : > { %v1721_v17 = vsub.f32 %v286_v2, %v1688_v5  ;;  %v1728_v19 = vsub.f32 %v285_v6, %v1699_v9  ;;  %v1731_v20 = vsub.f32 %v284_v7, %v1701_v10  ;;  %v1737_v24 = vand.u32 4294901760, %v281_v13  ;;  %v277_v40 = vld [vmem:[%s2353_s1 + $0x20] sm:$0xff]  ;;  %v276_v46 = vld [vmem:[%s2353_s1 + $0x18] sm:$0xff]  ;;  %v275_v52 = vld [vmem:[%s2353_s1 + $0x10] sm:$0xff]  ;;  %s1488_s15 = sshra.s32 %s1310_s8, 4  ;;  %s1494_s25 = scalar_lea.hbm %s2358_s6, 2  ;;  %s1489_s15 = int_to_ptr.hbm [resolvable:$true] %s1488_s15 }
  0x2e   : > { %296 = vmatpush.msra.mxu0 %v1686_v4  ;;  %v344_v21 = vand.u32 4294901760, %v1713_v14  ;;  %v350_v22 = vand.u32 4294901760, %v1716_v15  ;;  %449 = vmatpush.msra.mxu2 %v1713_v14  ;;  %v1744_v27 = vand.u32 4294901760, %v280_v18  ;;  %v1748_v29 = vsub.f32 %v283_v8, %v1703_v11  ;;  %v274_v58 = vld [vmem:[%s2353_s1 + $0x8] sm:$0xff]  ;;  %v271_v61 = vld [vmem:[%s1669_s12] sm:$0xff]  ;;  %s1490_s11 = scalar_lea.hbm %s1489_s15, 1  ;;  %p1495_p0 = scmp.lt.s32.totalorder %s1489_s15, %s2358_s6 }
  0x2f   : > { %v356_v23 = vand.u32 4294901760, %v1721_v17  ;;  %v362_v26 = vand.u32 4294901760, %v1728_v19  ;;  %v368_v28 = vand.u32 4294901760, %v1731_v20  ;;  %509 = vmatpush.msra.mxu3 %v1686_v4  ;;  %v1765_v34 = vsub.f32 %v282_v12, %v1718_v16  ;;  %v273_v1 = vld [vmem:[%s2353_s1] sm:$0xff]  ;;  %p1491_p6 = scmp.ne.s32.totalorder %s1489_s15, %s1490_s11  ;;  %p1496_p1 = scmp.lt.s32.totalorder %s1494_s25, %s1490_s11 }
  0x30   : > { %298 = vmatpush.msra.mxu0 %v1688_v5  ;;  %v345_v30 = vsub.f32 %v1713_v14, %v344_v21  ;;  %v351_v31 = vsub.f32 %v1716_v15, %v350_v22  ;;  %v1767_v35 = vand.u32 4294901760, %v279_v25  ;;  %452 = vmatpush.msra.mxu2 %v1716_v15  ;;  %v374_v39 = vand.u32 4294901760, %v1748_v29 }
  0x31   : > { %v357_v32 = vsub.f32 %v1721_v17, %v356_v23  ;;  %511 = vmatpush.msra.mxu3 %v1688_v5  ;;  %v363_v38 = vsub.f32 %v1728_v19, %v362_v26  ;;  %v1779_v41 = vand.u32 4294901760, %v278_v33  ;;  %v1782_v42 = vsub.f32 %v281_v13, %v1737_v24  ;;  %p1492_p9 = pnand %p1491_p6, %p1629_p11  ;;  %p1497_p3 = por %p1496_p1, %p1495_p0 }
  0x32   : > { %300 = vmatpush.msra.mxu0 %v1699_v9  ;;  %v346_v36 = vand.u32 4294901760, %v345_v30  ;;  %v352_v37 = vand.u32 4294901760, %v351_v31  ;;  %455 = vmatpush.msra.mxu2 %v1721_v17  ;;  %v369_v44 = vsub.f32 %v1731_v20, %v368_v28  ;;  %v380_v45 = vand.u32 4294901760, %v1765_v34  ;;  %v272_v31 = vld [vmem:[%s1669_s12 + $0x8] sm:$0xff]  ;;  %s1307_s12 = sshll.u32 %s270_s7, 4  ;;  %s1308_s12 = int_to_ptr.vmem [resolvable:$true] %s1307_s12 }
  0x33   : > { %513 = vmatpush.msra.mxu3 %v1699_v9  ;;  %v358_v43 = vand.u32 4294901760, %v357_v32  ;;  %v1795_v47 = vsub.f32 %v280_v18, %v1744_v27  ;;  %v1797_v48 = vand.u32 4294901760, %v277_v40  ;;  %v364_v49 = vand.u32 4294901760, %v363_v38  ;;  %p1493_p13 = pneg %p1492_p9 }
  0x34   : > { %302 = vmatpush.msra.mxu0 %v1701_v10  ;;  %347 = vmatpush.msra.mxu1 %v346_v36  ;;  %v375_v50 = vsub.f32 %v1748_v29, %v374_v39  ;;  %v386_v51 = vand.u32 4294901760, %v1782_v42  ;;  %v1810_v53 = vsub.f32 %v279_v25, %v1767_v35  ;;  %v1812_v54 = vand.u32 4294901760, %v276_v46 }
  0x35   : > { %458 = vmatpush.msra.mxu2 %v1728_v19  ;;  %515 = vmatpush.msra.mxu3 %v1701_v10  ;;  %v370_v55 = vand.u32 4294901760, %v369_v44  ;;  %v381_v56 = vsub.f32 %v1765_v34, %v380_v45  ;;  %v392_v57 = vand.u32 4294901760, %v1795_v47  ;;  %v1825_v59 = vsub.f32 %v278_v33, %v1779_v41  ;;  %v677_v19 = vld [vmem:[%s2355_s3 + $0x60] sm:$0xff]  ;;  %p1498_p4 = pnand %p1497_p3, %p1493_p13 }
  0x36   : > { %304 = vmatpush.msra.mxu0 %v1703_v11  ;;  %353 = vmatpush.msra.mxu1 %v352_v37  ;;  %v1827_v60 = vand.u32 4294901760, %v275_v52  ;;  %v376_v62 = vand.u32 4294901760, %v375_v50  ;;  %v387_v63 = vsub.f32 %v1782_v42, %v386_v51  ;;  %v398_v0 = vand.u32 4294901760, %v1810_v53 }
  0x37   : > { %461 = vmatpush.msra.mxu2 %v1731_v20  ;;  %517 = vmatpush.msra.mxu3 %v1703_v11  ;;  %v1841_v2 = vsub.f32 %v277_v40, %v1797_v48  ;;  %v1843_v6 = vand.u32 4294901760, %v274_v58  ;;  %v1847_v7 = vsub.f32 %v276_v46, %v1812_v54  ;;  %v382_v8 = vand.u32 4294901760, %v381_v56 }
  0x38   : > { %306 = vmatpush.msra.mxu0 %v1718_v16  ;;  %359 = vmatpush.msra.mxu1 %v358_v43  ;;  %v393_v12 = vsub.f32 %v1795_v47, %v392_v57  ;;  %v404_v13 = vand.u32 4294901760, %v1825_v59  ;;  %v1855_v18 = vand.u32 4294901760, %v271_v61  ;;  %v1857_v25 = vand.u32 4294901760, %v273_v1 }
  0x39   : > { %464 = vmatpush.msra.mxu2 %v1748_v29  ;;  %519 = vmatpush.msra.mxu3 %v1718_v16  ;;  %v1861_v30 = vsub.f32 %v275_v52, %v1827_v60  ;;  %v388_v32 = vand.u32 4294901760, %v387_v63  ;;  %v399_v33 = vsub.f32 %v1810_v53, %v398_v0  ;;  %v410_v36 = vand.u32 4294901760, %v1841_v2 }
  0x3a   : > { %308 = vmatpush.msra.mxu0 %v1737_v24  ;;  %365 = vmatpush.msra.mxu1 %v364_v49  ;;  %v1871_v37 = vsub.f32 %v271_v61, %v1855_v18  ;;  %v416_v38 = vand.u32 4294901760, %v1847_v7  ;;  %v1876_v40 = vsub.f32 %v274_v58, %v1843_v6  ;;  %v394_v43 = vand.u32 4294901760, %v393_v12 }
  0x3b   : > { %467 = vmatpush.msra.mxu2 %v1765_v34  ;;  %521 = vmatpush.msra.mxu3 %v1737_v24  ;;  %v405_v44 = vsub.f32 %v1825_v59, %v404_v13  ;;  %v1886_v49 = vand.u32 4294901760, %v272_v31  ;;  %v400_v50 = vand.u32 4294901760, %v399_v33  ;;  %v411_v52 = vsub.f32 %v1841_v2, %v410_v36 }
  0x3c   : > { %310 = vmatpush.msra.mxu0 %v1744_v27  ;;  %371 = vmatpush.msra.mxu1 %v370_v55  ;;  %v1884_v46 = vand.u32 4294901760, %v1871_v37  ;;  %v422_v55 = vand.u32 4294901760, %v1861_v30  ;;  %v1896_v56 = vsub.f32 %v273_v1, %v1857_v25  ;;  %v428_v58 = vand.u32 4294901760, %v1876_v40 }
  0x3d   : > { %470 = vmatpush.msra.mxu2 %v1782_v42  ;;  %523 = vmatpush.msra.mxu3 %v1744_v27  ;;  %v406_v61 = vand.u32 4294901760, %v405_v44  ;;  %v1908_v1 = vsub.f32 %v272_v31, %v1886_v49 }
  0x3e   : > { %312 = vmatpush.msra.mxu0 %v1767_v35  ;;  %377 = vmatpush.msra.mxu1 %v376_v62  ;;  %v417_v62 = vsub.f32 %v1847_v7, %v416_v38  ;;  %v328_v63 = vsub.f32 %v1871_v37, %v1884_v46  ;;  %v423_v12 = vsub.f32 %v1861_v30, %v422_v55 }
  0x3f   : > { %473 = vmatpush.msra.mxu2 %v1795_v47  ;;  %525 = vmatpush.msra.mxu3 %v1767_v35  ;;  %v429_v33 = vsub.f32 %v1876_v40, %v428_v58  ;;  %v1926_v44 = vand.u32 4294901760, %v1908_v1 }
  0x40   : > { %314 = vmatpush.msra.mxu0 %v1779_v41  ;;  %383 = vmatpush.msra.mxu1 %v382_v8  ;;  %v412_v8 = vand.u32 4294901760, %v411_v52  ;;  %v418_v31 = vand.u32 4294901760, %v417_v62 }
  0x41   : > { %476 = vmatpush.msra.mxu2 %v1810_v53  ;;  %527 = vmatpush.msra.mxu3 %v1779_v41  ;;  %v336_v62 = vsub.f32 %v1908_v1, %v1926_v44 }
  0x42   : > { %316 = vmatpush.msra.mxu0 %v1797_v48  ;;  %389 = vmatpush.msra.mxu1 %v388_v32  ;;  %v434_v32 = vand.u32 4294901760, %v1896_v56 }
  0x43   : > { %479 = vmatpush.msra.mxu2 %v1825_v59  ;;  %529 = vmatpush.msra.mxu3 %v1797_v48  ;;  %v1946_v14 = vand.u32 4294901760, %v336_v62 }
  0x44   : > { %318 = vmatpush.msra.mxu0 %v1812_v54  ;;  %395 = vmatpush.msra.mxu1 %v394_v43  ;;  %v1923_v43 = vand.u32 4294901760, %v328_v63  ;;  %v435_v52 = vsub.f32 %v1896_v56, %v434_v32 }
  0x45   : > { %482 = vmatpush.msra.mxu2 %v1841_v2  ;;  %531 = vmatpush.msra.mxu3 %v1812_v54  ;;  %v673_v2 = vld [vmem:[%s2355_s3 + $0x40] sm:$0xff] }
  0x46   : > { %320 = vmatpush.msra.mxu0 %v1827_v60  ;;  %401 = vmatpush.msra.mxu1 %v400_v50  ;;  %v424_v50 = vand.u32 4294901760, %v423_v12  ;;  %v436_v63 = vand.u32 4294901760, %v435_v52 }
  0x47   : > { %485 = vmatpush.msra.mxu2 %v1847_v7  ;;  %533 = vmatpush.msra.mxu3 %v1827_v60 }
  0x48   : > { %322 = vmatpush.msra.mxu0 %v1843_v6  ;;  %407 = vmatpush.msra.mxu1 %v406_v61  ;;  %v430_v61 = vand.u32 4294901760, %v429_v33 }
  0x49   : > { %488 = vmatpush.msra.mxu2 %v1861_v30  ;;  %535 = vmatpush.msra.mxu3 %v1843_v6  ;;  %v672_v30 = vld [vmem:[%s2355_s3 + $0x38] sm:$0xff] }
  0x4a   : > { %324 = vmatpush.msra.mxu0 %v1857_v25  ;;  %413 = vmatpush.msra.mxu1 %v412_v8 }
  0x4b   : > { %491 = vmatpush.msra.mxu2 %v1876_v40  ;;  %330 = vmatmul.f32.vlgmr.msra.gmra.mxu0 %v1923_v43 }
  0x4c   : > { %554 = vmatpush.msrb.mxu0 %v344_v21  ;;  %419 = vmatpush.msra.mxu1 %v418_v31 }
  0x4d   : > { %494 = vmatpush.msra.mxu2 %v1896_v56  ;;  %537 = vmatpush.msra.mxu3 %v1857_v25  ;;  %v2111_v56 = vand.u32 4294901760, %v672_v30 }
  0x4e   : > { %558 = vmatpush.msrb.mxu0 %v350_v22  ;;  %425 = vmatpush.msra.mxu1 %v424_v50  ;;  %v670_v50 = vld [vmem:[%s2355_s3 + $0x28] sm:$0xff] }
  0x4f   : > { %497 = vmatmul.f32.vlgmr.msra.gmra.mxu2 %v1871_v37  ;;  %541 = vmatmul.f32.vlgmr.msra.gmra.mxu3 %v1884_v46  ;;  %v2127_v33 = vsub.f32 %v672_v30, %v2111_v56  ;;  %v2136_v62 = vand.u32 4294901760, %v670_v50 }
  0x50   : > { %562 = vmatpush.msrb.mxu0 %v356_v23  ;;  %431 = vmatpush.msra.mxu1 %v430_v61  ;;  %v2035_v23 = vand.u32 4294901760, %v677_v19 }
  0x52   : > { %566 = vmatpush.msrb.mxu0 %v362_v26  ;;  %437 = vmatpush.msra.mxu1 %v436_v63  ;;  %v2048_v29 = vsub.f32 %v677_v19, %v2035_v23  ;;  %v2150_v19 = vsub.f32 %v670_v50, %v2136_v62 }
  0x53   : > { %338 = vmatmul.f32.gmra.mxu0 %v1946_v14  ;;  %439 = vmatmul.f32.vlgmr.msra.gmra.mxu1 %v1855_v18 }
  0x54   : > { %570 = vmatpush.msrb.mxu0 %v368_v28  ;;  %625 = vmatpush.msrb.mxu1 %v1684_v3  ;;  %v680_v3 = vld [vmem:[%s2355_s3 + $0x78] sm:$0xff]  ;;  %v754_v42 = vand.u32 4294901760, %v2048_v29 }
  0x56   : > { %574 = vmatpush.msrb.mxu0 %v374_v39  ;;  %627 = vmatpush.msrb.mxu1 %v1686_v4  ;;  %v2000_v4 = vand.u32 4294901760, %v680_v3 }
  0x57   : > { %502 = vmatmul.f32.gmra.mxu2 %v1908_v1  ;;  %547 = vmatmul.f32.gmra.mxu3 %v1926_v44 }
  0x58   : > { %578 = vmatpush.msrb.mxu0 %v380_v45  ;;  %629 = vmatpush.msrb.mxu1 %v1688_v5  ;;  %v679_v5 = vld [vmem:[%s2355_s3 + $0x70] sm:$0xff] }
  0x59   : > { %686 = vmatpush.msrb.mxu2 %v2000_v4 }
  0x5a   : > { %582 = vmatpush.msrb.mxu0 %v386_v51  ;;  %631 = vmatpush.msrb.mxu1 %v1699_v9  ;;  %v2007_v9 = vsub.f32 %v680_v3, %v2000_v4  ;;  %v755_v51 = vsub.f32 %v2048_v29, %v754_v42  ;;  %v784_v3 = vand.u32 4294901760, %v2127_v33 }
  0x5b   : > { %443 = vmatmul.f32.gmra.mxu1 %v1886_v49 }
  0x5c   : > { %586 = vmatpush.msrb.mxu0 %v392_v57  ;;  %633 = vmatpush.msrb.mxu1 %v1701_v10  ;;  %v2009_v10 = vand.u32 4294901760, %v679_v5  ;;  %v736_v15 = vand.u32 4294901760, %v2007_v9 }
  0x5e   : > { %590 = vmatpush.msrb.mxu0 %v398_v0  ;;  %635 = vmatpush.msrb.mxu1 %v1703_v11  ;;  %v678_v11 = vld [vmem:[%s2355_s3 + $0x68] sm:$0xff]  ;;  %v737_v20 = vsub.f32 %v2007_v9, %v736_v15 }
  0x5f   : > { %688 = vmatpush.msrb.mxu2 %v2009_v10  ;;  %v2020_v17 = vand.u32 4294901760, %v678_v11 }
  0x60   : > { %594 = vmatpush.msrb.mxu0 %v404_v13  ;;  %637 = vmatpush.msrb.mxu1 %v1718_v16  ;;  %v2018_v16 = vsub.f32 %v679_v5, %v2009_v10  ;;  %v738_v26 = vand.u32 4294901760, %v737_v20  ;;  %v2095_v13 = vand.u32 4294901760, %v673_v2  ;;  %v669_v5 = vld [vmem:[%s2355_s3 + $0x20] sm:$0xff] }
  0x61   : > { %690 = vmatpush.msrb.mxu2 %v2020_v17  ;;  %v2033_v22 = vsub.f32 %v678_v11, %v2020_v17  ;;  %v2152_v20 = vand.u32 4294901760, %v669_v5 }
  0x62   : > { %598 = vmatpush.msrb.mxu0 %v410_v36  ;;  %639 = vmatpush.msrb.mxu1 %v1737_v24  ;;  %v742_v21 = vand.u32 4294901760, %v2018_v16  ;;  %v676_v24 = vld [vmem:[%s2355_s3 + $0x58] sm:$0xff] }
  0x63   : > { %v748_v28 = vand.u32 4294901760, %v2033_v22  ;;  %692 = vmatpush.msrb.mxu2 %v2035_v23  ;;  %v2051_v34 = vand.u32 4294901760, %v676_v24  ;;  %739 = vmatpush.msrb.mxu3 %v738_v26  ;;  %v785_v26 = vsub.f32 %v2127_v33, %v784_v3 }
  0x64   : > { %602 = vmatpush.msrb.mxu0 %v416_v38  ;;  %641 = vmatpush.msrb.mxu1 %v1744_v27  ;;  %v743_v27 = vsub.f32 %v2018_v16, %v742_v21 }
  0x65   : > { %694 = vmatpush.msrb.mxu2 %v2051_v34  ;;  %v2066_v47 = vsub.f32 %v676_v24, %v2051_v34 }
  0x66   : > { %606 = vmatpush.msrb.mxu0 %v422_v55  ;;  %643 = vmatpush.msrb.mxu1 %v1767_v35  ;;  %v675_v35 = vld [vmem:[%s2355_s3 + $0x50] sm:$0xff]  ;;  %v744_v39 = vand.u32 4294901760, %v743_v27  ;;  %v2109_v55 = vsub.f32 %v673_v2, %v2095_v13  ;;  %v668_v27 = vld [vmem:[%s2355_s3 + $0x18] sm:$0xff] }
  0x67   : > { %v2061_v45 = vand.u32 4294901760, %v675_v35  ;;  %v760_v57 = vand.u32 4294901760, %v2066_v47 }
  0x68   : > { %610 = vmatpush.msrb.mxu0 %v428_v58  ;;  %645 = vmatpush.msrb.mxu1 %v1779_v41  ;;  %v749_v41 = vsub.f32 %v2033_v22, %v748_v28  ;;  %v671_v58 = vld [vmem:[%s2355_s3 + $0x30] sm:$0xff]  ;;  %v778_v31 = vand.u32 4294901760, %v2109_v55 }
  0x69   : > { %745 = vmatpush.msrb.mxu3 %v744_v39  ;;  %v2073_v53 = vsub.f32 %v675_v35, %v2061_v45  ;;  %696 = vmatpush.msrb.mxu2 %v2061_v45  ;;  %v2120_v12 = vand.u32 4294901760, %v671_v58  ;;  %v2361_v39 = vand.u32 4294901760, %v2150_v19 }
  0x6a   : > { %614 = vmatpush.msrb.mxu0 %v434_v32  ;;  %647 = vmatpush.msrb.mxu1 %v1797_v48  ;;  %v750_v48 = vand.u32 4294901760, %v749_v41  ;;  %v779_v63 = vsub.f32 %v2109_v55, %v778_v31  ;;  %v2168_v41 = vsub.f32 %v669_v5, %v2152_v20 }
  0x6b   : > { %616 = vmatmul.f32.vlgmr.msrb.gmra.mxu0 %v1855_v18  ;;  %v766_v0 = vand.u32 4294901760, %v2073_v53  ;;  %v2134_v61 = vsub.f32 %v671_v58, %v2120_v12 }
  0x6c   : > { %649 = vmatpush.msrb.mxu1 %v1812_v54  ;;  %841 = vmatpush.msra.mxu0 %v2007_v9  ;;  %v674_v54 = vld [vmem:[%s2355_s3 + $0x48] sm:$0xff]  ;;  %v780_v24 = vand.u32 4294901760, %v779_v63 }
  0x6d   : > { %v2080_v59 = vand.u32 4294901760, %v674_v54  ;;  %751 = vmatpush.msrb.mxu3 %v750_v48  ;;  %v2363_v11 = vand.u32 4294901760, %v2134_v61 }
  0x6e   : > { %651 = vmatpush.msrb.mxu1 %v1827_v60  ;;  %844 = vmatpush.msra.mxu0 %v2018_v16  ;;  %v756_v60 = vand.u32 4294901760, %v755_v51  ;;  %v786_v51 = vand.u32 4294901760, %v785_v26 }
  0x6f   : > { %698 = vmatpush.msrb.mxu2 %v2080_v59  ;;  %v2093_v7 = vsub.f32 %v674_v54, %v2080_v59  ;;  %v791_v35 = vsub.f32 %v2134_v61, %v2363_v11  ;;  %v2174_v54 = vand.u32 4294901760, %v668_v27 }
  0x70   : > { %653 = vmatpush.msrb.mxu1 %v1843_v6  ;;  %847 = vmatpush.msra.mxu0 %v2033_v22  ;;  %v761_v6 = vsub.f32 %v2066_v47, %v760_v57 }
  0x71   : > { %757 = vmatpush.msrb.mxu3 %v756_v60  ;;  %v772_v38 = vand.u32 4294901760, %v2093_v7  ;;  %700 = vmatpush.msrb.mxu2 %v2095_v13  ;;  %v667_v60 = vld [vmem:[%s2355_s3 + $0x10] sm:$0xff]  ;;  %v792_v2 = vand.u32 4294901760, %v791_v35  ;;  %v2187_v30 = vsub.f32 %v668_v27, %v2174_v54 }
  0x72   : > { %655 = vmatpush.msrb.mxu1 %v1857_v25  ;;  %850 = vmatpush.msra.mxu0 %v2048_v29  ;;  %v767_v25 = vsub.f32 %v2073_v53, %v766_v0  ;;  %v762_v36 = vand.u32 4294901760, %v761_v6  ;;  %v797_v6 = vsub.f32 %v2150_v19, %v2361_v39 }
  0x73   : > { %620 = vmatmul.f32.gmra.mxu0 %v1886_v49  ;;  %657 = vmatmul.f32.vlgmr.msrb.gmra.mxu1 %v1855_v18  ;;  %v773_v8 = vsub.f32 %v2093_v7, %v772_v38  ;;  %v2359_v63 = vand.u32 4294901760, %v2187_v30 }
  0x74   : > { %899 = vmatpush.msra.mxu1 %v2000_v4  ;;  %853 = vmatpush.msra.mxu0 %v2066_v47  ;;  %v768_v40 = vand.u32 4294901760, %v767_v25  ;;  %v2360_v25 = vand.u32 4294901760, %v2168_v41  ;;  %v798_v58 = vand.u32 4294901760, %v797_v6 }
  0x75   : > { %763 = vmatpush.msrb.mxu3 %v762_v36  ;;  %702 = vmatpush.msrb.mxu2 %v2111_v56  ;;  %v774_v52 = vand.u32 4294901760, %v773_v8  ;;  %v2189_v36 = vand.u32 4294901760, %v667_v60 }
  0x76   : > { %901 = vmatpush.msra.mxu1 %v2009_v10  ;;  %856 = vmatpush.msra.mxu0 %v2073_v53  ;;  %v803_v8 = vsub.f32 %v2168_v41, %v2360_v25  ;;  %v2370_v53 = vand.u32 4294901760, %v2150_v19 }
  0x77   : > { %769 = vmatpush.msrb.mxu3 %v768_v40  ;;  %704 = vmatpush.msrb.mxu2 %v2120_v12  ;;  %v666_v40 = vld [vmem:[%s2355_s3 + $0x8] sm:$0xff]  ;;  %v2204_v5 = vsub.f32 %v667_v60, %v2189_v36 }
  0x78   : > { %903 = vmatpush.msra.mxu1 %v2020_v17  ;;  %859 = vmatpush.msra.mxu0 %v2093_v7  ;;  %v2197_v50 = vand.u32 4294901760, %v666_v40  ;;  %v804_v26 = vand.u32 4294901760, %v803_v8  ;;  %v2372_v7 = vand.u32 4294901760, %v2187_v30 }
  0x79   : > { %775 = vmatpush.msrb.mxu3 %v774_v52  ;;  %706 = vmatpush.msrb.mxu2 %v2136_v62  ;;  %v2362_v60 = vand.u32 4294901760, %v2204_v5 }
  0x7a   : > { %905 = vmatpush.msra.mxu1 %v2035_v23  ;;  %862 = vmatpush.msra.mxu0 %v2109_v55  ;;  %v2210_v27 = vsub.f32 %v666_v40, %v2197_v50 }
  0x7b   : > { %661 = vmatmul.f32.gmra.mxu1 %v1886_v49  ;;  %781 = vmatpush.msrb.mxu3 %v780_v24  ;;  %v665_v24 = vld [vmem:[%s2355_s3] sm:$0xff] }
  0x7c   : > { %907 = vmatpush.msra.mxu1 %v2051_v34  ;;  %865 = vmatpush.msra.mxu0 %v2127_v33  ;;  %v2212_v35 = vand.u32 4294901760, %v665_v24  ;;  %v820_v6 = vand.u32 4294901760, %v2210_v27 }
  0x7d   : > { %708 = vmatpush.msrb.mxu2 %v2152_v20  ;;  %787 = vmatpush.msrb.mxu3 %v786_v51  ;;  %v809_v51 = vsub.f32 %v2187_v30, %v2359_v63  ;;  %v815_v63 = vsub.f32 %v2204_v5, %v2362_v60 }
  0x7e   : > { %909 = vmatpush.msra.mxu1 %v2061_v45  ;;  %868 = vmatpush.msra.mxu0 %v2134_v61  ;;  %v2226_v40 = vsub.f32 %v665_v24, %v2212_v35  ;;  %v821_v25 = vsub.f32 %v2210_v27, %v820_v6 }
  0x7f   : > { %710 = vmatpush.msrb.mxu2 %v2174_v54  ;;  %793 = vmatpush.msrb.mxu3 %v792_v2  ;;  %v1436_v2 = vld [vmem:[%s2354_s2] ss:$0 sm:$0xff]  ;;  %v810_v8 = vand.u32 4294901760, %v809_v51 }
  0x80   : > { %911 = vmatpush.msra.mxu1 %v2080_v59  ;;  %871 = vmatpush.msra.mxu0 %v2150_v19  ;;  %v826_v24 = vand.u32 4294901760, %v2226_v40  ;;  %v822_v60 = vand.u32 4294901760, %v821_v25 }
  0x81   : > { %712 = vmatpush.msrb.mxu2 %v2189_v36  ;;  %799 = vmatpush.msrb.mxu3 %v798_v58 }
  0x82   : > { %913 = vmatpush.msra.mxu1 %v2095_v13  ;;  %874 = vmatpush.msra.mxu0 %v2168_v41  ;;  %v827_v11 = vsub.f32 %v2226_v40, %v826_v24 }
  0x83   : > { %714 = vmatpush.msrb.mxu2 %v2197_v50  ;;  %805 = vmatpush.msrb.mxu3 %v804_v26  ;;  %v816_v26 = vand.u32 4294901760, %v815_v63 }
  0x84   : > { %915 = vmatpush.msra.mxu1 %v2111_v56  ;;  %877 = vmatpush.msra.mxu0 %v2187_v30  ;;  %v828_v63 = vand.u32 4294901760, %v827_v11 }
  0x85   : > { %716 = vmatpush.msrb.mxu2 %v2212_v35  ;;  %811 = vmatpush.msrb.mxu3 %v810_v8 }
  0x86   : > { %917 = vmatpush.msra.mxu1 %v2120_v12  ;;  %880 = vmatpush.msra.mxu0 %v2204_v5 }
  0x87   : > { %946 = vmatpush.msra.mxu2 %v736_v15  ;;  %817 = vmatpush.msrb.mxu3 %v816_v26 }
  0x88   : > { %919 = vmatpush.msra.mxu1 %v2136_v62  ;;  %883 = vmatpush.msra.mxu0 %v2210_v27 }
  0x89   : > { %722 = vmatmul.f32.vlgmr.msrb.gmra.mxu2 %v1923_v43  ;;  %823 = vmatpush.msrb.mxu3 %v822_v60 }
  0x8a   : > { %921 = vmatpush.msra.mxu1 %v2152_v20  ;;  %950 = vmatpush.msra.mxu2 %v742_v21 }
  0x8b   : > { %886 = vmatpush.msra.mxu0 %v2226_v40  ;;  %829 = vmatpush.msrb.mxu3 %v828_v63 }
  0x8c   : > { %923 = vmatpush.msra.mxu1 %v2174_v54  ;;  %954 = vmatpush.msra.mxu2 %v748_v28 }
  0x8d   : > { %889 = vmatmul.f32.vlgmr.msra.gmra.mxu0 %v1871_v37  ;;  %1017 = vmatpush.msra.mxu3 %v2000_v4 }
  0x8e   : > { %925 = vmatpush.msra.mxu1 %v2189_v36  ;;  %958 = vmatpush.msra.mxu2 %v754_v42 }
  0x8f   : > { %831 = vmatmul.f32.vlgmr.msrb.gmra.mxu3 %v1855_v18 }
  0x90   : > { %927 = vmatpush.msra.mxu1 %v2197_v50  ;;  %962 = vmatpush.msra.mxu2 %v760_v57 }
  0x91   : > { %730 = vmatmul.f32.gmra.mxu2 %v1946_v14  ;;  %1019 = vmatpush.msra.mxu3 %v2009_v10 }
  0x92   : > { %929 = vmatpush.msra.mxu1 %v2212_v35  ;;  %966 = vmatpush.msra.mxu2 %v766_v0  ;;  %v2371_v0 = vand.u32 4294901760, %v2168_v41 }
  0x93   : > { %933 = vmatmul.f32.vlgmr.msra.gmra.mxu1 %v1884_v46  ;;  %1021 = vmatpush.msra.mxu3 %v2020_v17 }
  0x94   : > { %970 = vmatpush.msra.mxu2 %v772_v38 }
  0x95   : > { %894 = vmatmul.f32.gmra.mxu0 %v1908_v1  ;;  %1023 = vmatpush.msra.mxu3 %v2035_v23  ;;  %v2369_v1 = vand.u32 4294901760, %v2134_v61 }
  0x96   : > { %974 = vmatpush.msra.mxu2 %v778_v31 }
  0x97   : > { %1025 = vmatpush.msra.mxu3 %v2051_v34 }
  0x98   : > { %978 = vmatpush.msra.mxu2 %v784_v3  ;;  %835 = vmatmul.f32.gmra.mxu3 %v1886_v49 }
  0x99   : > { %1027 = vmatpush.msra.mxu3 %v2061_v45 }
  0x9a   : > { %982 = vmatpush.msra.mxu2 %v2369_v1 }
  0x9b   : > { %939 = vmatmul.f32.gmra.mxu1 %v1926_v44  ;;  %1029 = vmatpush.msra.mxu3 %v2080_v59  ;;  %v2373_v59 = vand.u32 4294901760, %v2204_v5 }
  0x9c   : > { %986 = vmatpush.msra.mxu2 %v2370_v53 }
  0x9d   : > { %1031 = vmatpush.msra.mxu3 %v2095_v13 }
  0x9e   : > { %990 = vmatpush.msra.mxu2 %v2371_v0 }
  0x9f   : > { %1033 = vmatpush.msra.mxu3 %v2111_v56 }
  0xa0   : > { %994 = vmatpush.msra.mxu2 %v2372_v7 }
  0xa1   : > { %1035 = vmatpush.msra.mxu3 %v2120_v12  ;;  %v1098_v12 = vld [vmem:[%s2357_s5] sm:$0xf] }
  0xa2   : > { %998 = vmatpush.msra.mxu2 %v2373_v59  ;;  %v1107_v31 = vsel %vm1105_vm1, %v1098_v12, 0 }
  0xa3   : > { %1037 = vmatpush.msra.mxu3 %v2136_v62  ;;  %v1124_v33 = vand.u32 4294901760, %v1107_v31 }
  0xa4   : > { %1002 = vmatpush.msra.mxu2 %v820_v6 }
  0xa5   : > { %1039 = vmatpush.msra.mxu3 %v2152_v20  ;;  %v1159_v62 = vsub.f32 %v1107_v31, %v1124_v33  ;;  %1125 = vmatpush.msrb.mxu0 %v1124_v33 }
  0xa6   : > { %1006 = vmatpush.msra.mxu2 %v826_v24 }
  0xa7   : > { %1008 = vmatmul.f32.vlgmr.msra.gmra.mxu2 %v1855_v18  ;;  %1041 = vmatpush.msra.mxu3 %v2174_v54  ;;  %v1160_v19 = vand.u32 4294901760, %v1159_v62 }
  0xa8   : > { %1386 = vmatpush.msrb.mxu2 %v1124_v33 }
  0xa9   : > { %1043 = vmatpush.msra.mxu3 %v2189_v36  ;;  %v1161_v41 = vsub.f32 %v1159_v62, %v1160_v19  ;;  %1250 = vmatpush.msra.mxu0 %v1160_v19 }
  0xaa   : > { %1190 = vmatpush.msra.mxu2 %v1159_v62 }
  0xab   : > { %1045 = vmatpush.msra.mxu3 %v2197_v50 }
  0xad   : > { %1047 = vmatpush.msra.mxu3 %v2212_v35 }
  0xae   : > { %1049 = vmatmul.f32.vlgmr.msra.gmra.mxu3 %v1855_v18 }
  0xaf   : > { %1012 = vmatmul.f32.gmra.mxu2 %v1886_v49 }
  0xb6   : > { %1053 = vmatmul.f32.gmra.mxu3 %v1886_v49 }
  0xc8   : > { %v2122_v32 = vpop.f32.mrf.mxu0 }
  0xc9   : > { %v332_v51 = vadd.f32 %v1436_v2, %v2122_v32 }
  0xd0   : > { %v2171_v48 = vpop.f32.mrf.mxu1  ;;  %v339_v52 = vpop.f32.mrf.mxu0 }
  0xd1   : > { %v340_v15 = vadd.f32 %v1436_v2, %v339_v52  ;;  %v441_v16 = vadd.f32 %v2171_v48, %v332_v51  ;;  %v1162_v48 = vand.u32 4294901760, %v1161_v41 }
  0xd2   : > { %v498_v58 = vpop.f32.mrf.mxu2  ;;  %v542_v9 = vpop.f32.mrf.mxu3 }
  0xd3   : > { %v499_v22 = vadd.f32 %v498_v58, %v441_v16  ;;  %1387 = vmatpush.msrb.mxu3 %v1162_v48  ;;  %1163 = vmatpush.msrb.mxu1 %v1162_v48 }
  0xd5   : > { %v543_v29 = vadd.f32 %v542_v9, %v499_v22  ;;  %1218 = vmatpush.msra.mxu3 %v1124_v33  ;;  %1276 = vmatpush.msra.mxu1 %v1124_v33 }
  0xd8   : > { %v444_v39 = vpop.f32.mrf.mxu1 }
  0xd9   : > { %v445_v21 = vadd.f32 %v444_v39, %v340_v15 }
  0xda   : > { %v503_v46 = vpop.f32.mrf.mxu2  ;;  %v548_v4 = vpop.f32.mrf.mxu3 }
  0xdb   : > { %v504_v28 = vadd.f32 %v503_v46, %v445_v21 }
  0xdd   : > { %v549_v42 = vadd.f32 %v548_v4, %v504_v28 }
  0xe8   : > { %v617_v43 = vpop.f32.mrf.mxu0 }
  0xe9   : > { %v618_v10 = vadd.f32 %v617_v43, %v543_v29 }
  0xf0   : > { %v658_v37 = vpop.f32.mrf.mxu1  ;;  %v621_v14 = vpop.f32.mrf.mxu0 }
  0xf1   : > { %v622_v44 = vadd.f32 %v621_v14, %v549_v42  ;;  %v659_v17 = vadd.f32 %v658_v37, %v618_v10 }
  0xf3   : > { %v1058_v34 = vsel %vm1057_vm0, %v659_v17, -inf }
  0xf8   : > { %v662_v23 = vpop.f32.mrf.mxu1 }
  0xf9   : > { %v663_v47 = vadd.f32 %v662_v23, %v622_v44 }
  0xfb   : > { %v1059_v57 = vsel %vm1057_vm0, %v663_v47, -inf }
  0xfc   : > { %v1060_v45 = vmax.f32 %v1058_v34, %v1059_v57 }
  0xfe   : > { %v1061_v38 = vrot.slane %v1060_v45, 4 }
 0x100   : > { %v1062_v55 = vmax.f32 %v1060_v45, %v1061_v38 }
 0x102   : > { %v1063_v13 = vrot.slane %v1062_v55, 2 }
 0x104   : > { %v1064_v56 = vmax.f32 %v1062_v55, %v1063_v13  ;;  %v1437_v55 = vld [vmem:[%s2356_s4] ss:$0 sm:$0xff] }
 0x106   : > { %v1065_v32 = vrot.slane %v1064_v56, 1 }
 0x108   : > { %v1066_v61 = vmax.f32 %v1064_v56, %v1065_v32 }
 0x10a   : > { %v1067_v3 = vsub.f32 %v659_v17, %v1066_v61  ;;  %v1068_v11 = vsub.f32 %v663_v47, %v1066_v61  ;;  %v890_v34 = vpop.f32.mrf.mxu0 }
 0x10c   : > { %v1069_v20 = vmul.f32 1.442695, %v1067_v3  ;;  %v1071_v39 = vmul.f32 1.442695, %v1068_v11  ;;  %v723_v17 = vpop.f32.mrf.mxu2 }
 0x10d   : > { %v724_v32 = vadd.f32 %v1437_v55, %v723_v17 }
 0x10e   : > { %1438 = vpow2.f32 %v1069_v20 }
 0x10f   : > { %1440 = vpow2.f32 %v1071_v39 }
 0x110   : > { %v934_v53 = vpop.f32.mrf.mxu1 }
 0x112   : > { %v832_v44 = vpop.f32.mrf.mxu3  ;;  %v895_v7 = vpop.f32.mrf.mxu0 }
 0x113   : > { %v833_v33 = vadd.f32 %v832_v44, %v724_v32 }
 0x114   : > { %v1439_v54 = vpop.eup %1438  ;;  %v731_v23 = vpop.f32.mrf.mxu2 }
 0x115   : > { %v1441_v25 = vpop.eup %1440  ;;  %v1073_v30 = vsel %vm1057_vm0, %v1439_v54, 0.0  ;;  %v732_v31 = vadd.f32 %v1437_v55, %v731_v23  ;;  %v891_v39 = vadd.f32 %v890_v34, %v833_v33 }
 0x116   : > { %v1074_v36 = vsel %vm1057_vm0, %v1441_v25, 0.0 }
 0x117   : > { %v1075_v18 = vadd.f32 %v1074_v36, %v1073_v30 }
 0x118   : > { %v940_v45 = vpop.f32.mrf.mxu1 }
 0x119   : > { %v1076_v50 = vrot.slane %v1075_v18, 4 }
 0x11b   : > { %v1077_v52 = vadd.f32 %v1076_v50, %v1075_v18  ;;  %v836_v1 = vpop.f32.mrf.mxu3 }
 0x11c   : > { %v837_v61 = vadd.f32 %v836_v1, %v732_v31 }
 0x11d   : > { %v1078_v5 = vrot.slane %v1077_v52, 2 }
 0x11e   : > { %v896_v41 = vadd.f32 %v895_v7, %v837_v61 }
 0x11f   : > { %v1079_v27 = vadd.f32 %v1078_v5, %v1077_v52 }
 0x120   : > { %v941_v30 = vadd.f32 %v940_v45, %v896_v41 }
 0x121   : > { %v1080_v35 = vrot.slane %v1079_v27, 1 }
 0x123   : > { %v1081_v60 = vadd.f32 %v1080_v35, %v1079_v27 }
 0x125   : > { %1442 = vrcp.f32 %v1081_v60  ;;  %v1093_v58 = vand.u32 2147483648, %v1081_v60  ;;  %v1091_v49 = vand.u32 2147483647, %v1081_v60  ;;  %vm1087_vm3 = vweird.f32 %v1081_v60 }
 0x127   : > { %v1094_v26 = vor.u32 1.1754944e-38, %v1093_v58  ;;  %vm1092_vm5 = vcmp.eq.f32.partialorder %v1091_v49, 8.507059e+37 }
 0x12a   : > { %v1009_v57 = vpop.f32.mrf.mxu2 }
 0x12b   : > { %v1443_v2 = vpop.eup %1442 }
 0x12c   : > { %v1083_v6 = vmul.f32 %v1443_v2, %v1081_v60  ;;  %vm1088_vm2 = vweird.f32 %v1443_v2 }
 0x12d   : > { %vm1089_vm4 = vmor %vm1087_vm3, %vm1088_vm2 }
 0x12e   : > { %v1084_v40 = vsub.f32 1.0, %v1083_v6 }
 0x130   : > { %v1085_v8 = vmul.f32 %v1443_v2, %v1084_v40 }
 0x131   : > { %v1050_v47 = vpop.f32.mrf.mxu3 }
 0x132   : > { %v1086_v24 = vadd.f32 %v1443_v2, %v1085_v8  ;;  %v1013_v38 = vpop.f32.mrf.mxu2 }
 0x133   : > { %v1014_v35 = vadd.f32 %v1013_v38, %v941_v30 }
 0x134   : > { %v1090_v51 = vsel %vm1089_vm4, %v1443_v2, %v1086_v24 }
 0x135   : > { %v1095_v9 = vsel %vm1092_vm5, %v1094_v26, %v1090_v51 }
 0x136   : > { %v1096_v15 = vmul.f32 %v1439_v54, %v1095_v9  ;;  %v1097_v63 = vmul.f32 %v1441_v25, %v1095_v9  ;;  %v935_v25 = vadd.f32 %v934_v53, %v891_v39 }
 0x138   : > { %v1100_v43 = vsel %vm1057_vm0, %v1096_v15, 0  ;;  %v1103_v16 = vsel %vm1057_vm0, %v1097_v63, 0  ;;  %v1010_v27 = vadd.f32 %v1009_v57, %v935_v25 }
 0x139   : > { %v1126_v21 = vand.u32 4294901760, %v1100_v43  ;;  %v1134_v46 = vand.u32 4294901760, %v1103_v16  ;;  %v1054_v0 = vpop.f32.mrf.mxu3 }
 0x13a   : > { %v1051_v8 = vadd.f32 %v1050_v47, %v1010_v27  ;;  %v1055_v49 = vadd.f32 %v1054_v0, %v1014_v35 }
 0x13b   : > { %v1127_v22 = vsub.f32 %v1100_v43, %v1126_v21  ;;  %1165 = vmatmul.f32.vlgmr.msrb.gmra.mxu1 %v1126_v21  ;;  %v1135_v37 = vsub.f32 %v1103_v16, %v1134_v46  ;;  %1169 = vmatmul.f32.vlgmr.msrb.gmra.mxu3 %v1134_v46 }
 0x13d   : > { %v1128_v28 = vand.u32 4294901760, %v1127_v22  ;;  %v1136_v4 = vand.u32 4294901760, %v1135_v37 }
 0x13f   : > { %v1129_v29 = vsub.f32 %v1127_v22, %v1128_v28  ;;  %v1137_v14 = vsub.f32 %v1135_v37, %v1136_v4 }
 0x141   : > { %v1130_v10 = vand.u32 4294901760, %v1129_v29  ;;  %v1138_v42 = vand.u32 4294901760, %v1137_v14 }
 0x143   : > { %1131 = vmatmul.f32.vlgmr.msrb.gmra.mxu0 %v1130_v10  ;;  %1139 = vmatmul.f32.vlgmr.msrb.gmra.mxu2 %v1138_v42 }
 0x144   : > { %1222 = vmatmul.f32.vlgmr.msra.gmra.mxu3 %v1128_v28  ;;  %1278 = vmatmul.f32.vlgmr.msra.gmra.mxu1 %v1126_v21 }
 0x14b   : > { %1193 = vmatmul.f32.vlgmr.msra.gmra.mxu2 %v1127_v22  ;;  %1252 = vmatmul.f32.vlgmr.msra.gmra.mxu0 %v1126_v21 }
 0x14c   : > { %1228 = vmatmul.f32.gmra.mxu3 %v1136_v4  ;;  %1282 = vmatmul.f32.gmra.mxu1 %v1134_v46 }
 0x153   : > { %1198 = vmatmul.f32.gmra.mxu2 %v1135_v37  ;;  %1256 = vmatmul.f32.gmra.mxu0 %v1134_v46 }
 0x1b8   : > { %v1166_v12 = vpop.f32.mrf.mxu1 }
 0x1be   : > { %v1170_v59 = vpop.f32.mrf.mxu3 }
 0x1c0   : > { %v1132_v13 = vpop.f32.mrf.mxu0 }
 0x1c1   : > { %v1167_v62 = vadd.f32 %v1166_v12, %v1132_v13  ;;  %v1279_v48 = vpop.f32.mrf.mxu1 }
 0x1c6   : > { %v1140_v56 = vpop.f32.mrf.mxu2 }
 0x1c7   : > { %v1223_v3 = vpop.f32.mrf.mxu3  ;;  %v1171_v36 = vadd.f32 %v1170_v59, %v1140_v56 }
 0x1c8   : > { %v1253_v20 = vpop.f32.mrf.mxu0 }
 0x1c9   : > { %v1283_v58 = vpop.f32.mrf.mxu1 }
 0x1ce   : > { %v1194_v11 = vpop.f32.mrf.mxu2 }
 0x1cf   : > { %v1195_v19 = vadd.f32 %v1194_v11, %v1167_v62  ;;  %v1229_v5 = vpop.f32.mrf.mxu3 }
 0x1d0   : > { %v1257_v2 = vpop.f32.mrf.mxu0 }
 0x1d1   : > { %v1224_v54 = vadd.f32 %v1223_v3, %v1195_v19 }
 0x1d3   : > { %v1254_v50 = vadd.f32 %v1253_v20, %v1224_v54 }
 0x1d5   : > { %v1280_v6 = vadd.f32 %v1279_v48, %v1254_v50 }
 0x1d6   : > { %v1199_v18 = vpop.f32.mrf.mxu2 }
 0x1d7   : > { %v1200_v52 = vadd.f32 %v1199_v18, %v1171_v36  ;;  %v1286_v26 = vmul.f32 %v1280_v6, %v1051_v8 }
 0x1d9   : > { %v1230_v60 = vadd.f32 %v1229_v5, %v1200_v52 }
 0x1db   : > { %v1258_v40 = vadd.f32 %v1257_v2, %v1230_v60 }
 0x1dd   : > { %v1284_v24 = vadd.f32 %v1283_v58, %v1258_v40 }
 0x1df   : > { %v1287_v51 = vmul.f32 %v1284_v24, %v1055_v49 }
 0x1e1   : > { %v1288_v9 = vadd.f32 %v1287_v51, %v1286_v26 }
 0x1e3   : > { %v1289_v15 = vrot.slane %v1288_v9, 4 }
 0x1e5   : > { %v1290_v63 = vadd.f32 %v1289_v15, %v1288_v9 }
 0x1e7   : > { %v1291_v43 = vrot.slane %v1290_v63, 2 }
 0x1e9   : > { %v1292_v16 = vadd.f32 %v1291_v43, %v1290_v63 }
 0x1eb   : > { %v1293_v21 = vrot.slane %v1292_v16, 1 }
 0x1ed   : > { %v1294_v46 = vadd.f32 %v1293_v21, %v1292_v16 }
 0x1ef   : > { %1295 = vst [vmem:[%s270_s7] sm:$0x1] %v1294_v46 }
 0x1f0   : > { %1501 = shalt.err (!%p1498_p4)
}
 0x1f1   : > { %1390 = dma.vmem_to_hbm [thread:$0]  (%p1629_p11), %s1308_s12, 16, %s1310_s8, %s1297_s14  }
 0x1f2 PF: > { %s1321_s18 = sand.u32 1, %s1528_s21   ;;  %p2374_p7 = scmp.ge.s32.totalorder %s1540_s24, 2 }
 0x1f3   : > { %s1322_s19 = scalar_lea.sflag [#allocation4], %s1321_s18 }
 0x1f4   : > { %p1397_p5 = pnand %p2374_p7, %p1633_p12 }
 0x1f6   : > { %p1398_p8 = pneg %p1397_p5 }
 0x1f8   : > { %1523 = dma.done.wait (%p1398_p8), %s1322_s19, 16  }
 0x1f9   : > { %1525 = vsyncadd (%p1398_p8), %s1322_s19, 4294967280  ;;  %p19_p10 = scmp.ge.s32.totalorder %s1604_s27, 4   ;;  %s2375_s21 = smov %s1532_s22 }
 0x1fa   : > { %s2376_s22 = smov %s1536_s23  ;;  %s2377_s23 = smov %s1616_s30 }
 0x1fb   : > { %s2378_s24 = smov %s1604_s27  ;;  %21 = sbr.rel (!%p19_p10) target bundleno = 5 (0x5), region = 89 }
 0x200   :  { %1327 = vsyncpa [#allocation3], 1 }
 0x201   :  { %1329 = vsyncpa [#allocation3 + $0x1], 1 }
 0x202   :  { %1330 = vsyncpa [#allocation4], 1 }
 0x203   :  { %1332 = vsyncpa [#allocation4 + $0x1], 1 }

// kernel: tpu_custom_call.1
= control target key start
LH: loop header
LB: loop body
LE: loop exit
PB: predicated region body
PF: predicated region fallthrough
CT: control target
= control target key end

     0   :  { %11 = vsyncpa [#allocation3], 0  ;;  %s2352_s0 = inlined_call_operand.hbm [shape: f32[2,16,128], index: 0, kind: input, shape index: {}]   ;;  %s2353_s1 = inlined_call_operand.vmem [shape: f32[128,4], index: 1, kind: input, shape index: {}]   ;;  %s2354_s2 = inlined_call_operand.vmem [shape: f32[1,4], index: 2, kind: input, shape index: {}]   ;;  %s2355_s3 = inlined_call_operand.vmem [shape: f32[128,128], index: 3, kind: input, shape index: {}]   ;;  %s2356_s4 = inlined_call_operand.vmem [shape: f32[1,128], index: 4, kind: input, shape index: {}]   ;;  %s2357_s5 = inlined_call_operand.vmem [shape: f32[4,128], index: 5, kind: input, shape index: {}]   ;;  %s2358_s6 = inlined_call_operand.hbm [shape: f32[2,1,128], index: 6, kind: output, shape index: {}]  }
   0x1   :  { %13 = vsyncpa [#allocation3 + $0x1], 0 }
   0x2   :  { %14 = vsyncpa [#allocation4], 0 }
   0x3   :  { %16 = vsyncpa [#allocation4 + $0x1], 0  ;;  %s1579_s21 = smov 0   ;;  %s1581_s22 = smov 0  }
   0x4   :  { %s1583_s23 = smov 0   ;;  %s1585_s24 = smov 0  }
   0x5 LB: > { %s1600_s25 = sadd.s32 4294967295, %s1540_s24   ;;  %s1375_s26 = sadd.s32 4294967294, %s1540_s24   ;;  %s1540_s24 = sphi %s1585_s24, %s2378_s24   ;;  %s1536_s23 = sphi %s1583_s23, %s2377_s23   ;;  %s1532_s22 = sphi %s1581_s22, %s2376_s22   ;;  %s1528_s21 = sphi %s1579_s21, %s2375_s21  }
   0x6   : > { %s1604_s27 = sadd.s32 1, %s1540_s24   ;;  %s29_s28 = sadd.s32 1, %s1536_s23 }
   0x7   : > { %s26_s29 = ssub.s32 %s1540_s24, %s1604_s27  ;;  %p36_p0 = scmp.ne.s32.totalorder %s1536_s23, %s1532_s22 }
   0x8   : > { %p27_p1 = scmp.eq.s32.totalorder %s26_s29, 0  ;;  %p37_p2 = scmp.eq.s32.totalorder %s1540_s24, 0 }
   0x9   : > { %p42_p3 = scmp.ne.s32.totalorder %s1532_s22, %s1528_s21  ;;  %p43_p4 = scmp.eq.s32.totalorder %s1600_s25, 0 }
   0xa   : > { %s1616_s30 = scalar_select %p27_p1, %s1536_s23, %s29_s28  }
   0xb   : > { %p1618_p5 = por %p37_p2, %p36_p0  ;;  %p1622_p6 = por %p43_p4, %p42_p3 }
   0xc   : > { %p171_p7 = scmp.eq.s32.totalorder %s1600_s25, 1  ;;  %p177_p8 = scmp.eq.s32.totalorder %s1375_s26, 1 }
   0xd   : > { %p1400_p10 = scmp.lt.s32.totalorder %s1540_s24, 2  ;;  %s212_s11 = sand.u32 1, %s1536_s23  }
   0xe   : > { %p1629_p11 = por %p171_p7, %p36_p0  ;;  %p1633_p12 = por %p177_p8, %p42_p3 }
   0xf   : > { %s1385_s12 = sshll.u32 %s1540_s24, 4  ;;  %s1378_s13 = sshll.u32 %s212_s11, 4 }
  0x10   : > { %s221_s16 = scalar_lea.hbm %s2352_s0, %s1385_s12  ;;  %s216_s18 = scalar_lea.vmem [#allocation2], %s1378_s13 }
  0x11   : > { %s222_s17 = sshll.u32 %s221_s16, 4  ;;  %s224_s19 = sshll.u32 %s216_s18, 4  ;;  %s223_s17 = int_to_ptr.hbm [resolvable:$true] %s222_s17  ;;  %s225_s19 = int_to_ptr.vmem [resolvable:$true] %s224_s19 }
  0x12   : > { %p1644_p13 = pnand %p1400_p10, %p1618_p5  ;;  %p1381_p0 = scmp.ge.s32.totalorder %s1540_s24, 1 }
  0x13   : > { %p232_p1 = scmp.lt.s32.totalorder %s1540_s24, 3  ;;  %s213_s26 = scalar_lea.sflag [#allocation3], %s212_s11 }
  0x14   : > { %s1444_s28 = sshra.s32 %s223_s17, 4  ;;  %p1448_p3 = pneg %p1644_p13  ;;  %s1445_s28 = int_to_ptr.hbm [resolvable:$true] %s1444_s28 }
  0x15   : > { %s1446_s29 = scalar_lea.hbm %s1445_s28, 16  ;;  %s1451_s7 = scalar_lea.hbm %s2352_s0, 32 }
  0x16   : > { %p1447_p2 = scmp.ne.s32.totalorder %s1445_s28, %s1446_s29  ;;  %p1452_p5 = scmp.lt.s32.totalorder %s1445_s28, %s2352_s0 }
  0x17   : > { %p1453_p8 = scmp.lt.s32.totalorder %s1451_s7, %s1446_s29 }
  0x18   : > { %p1449_p4 = pnand %p1448_p3, %p1447_p2 }
  0x19   : > { %p1454_p10 = por %p1453_p8, %p1452_p5 }
  0x1a   : > { %p1450_p7 = pneg %p1449_p4 }
  0x1c   : > { %p1455_p9 = pnand %p1454_p10, %p1450_p7 }
  0x1e   : > { %1458 = shalt.err (!%p1455_p9)
}
  0x1f   : > { %s1542_s11 = smov 128   ;;  %s1543_s16 = smov 8  }
  0x20   : > { %1395 = dma.hbm_to_vmem [thread:$0]  (!%p1644_p13), %s223_s17, 256, %s225_s19, %s213_s26, %s1542_s11, %s1542_s11, %s1543_s16  }
  0x21   : > { %p233_p2 = pnand %p1381_p0, %p232_p1 }
  0x22   : > { %s1665_s18 = sand.u32 (!%p233_p2), 1, %s1532_s22  }
  0x23   : > { %236 = sbr.rel (%p233_p2) target bundleno = 498 (0x1f2), region = 44  ;;  %s1382_s28 = sshll.u32 (!%p233_p2), %s1665_s18, 4 }
  0x24   : > { %s239_s29 = scalar_lea.sflag (!%p233_p2), [#allocation3], %s1665_s18  ;;  %s1669_s12 = scalar_lea.vmem (!%p233_p2), [#allocation2], %s1382_s28 }
  0x28   : > { %1519 = dma.done.wait (%p1622_p6), %s239_s29, 256  }
  0x29   : > { %1521 = vsyncadd (%p1622_p6), %s239_s29, 4294967040  ;;  %v288_v0 = vld [vmem:[%s2353_s1 + $0x78] sm:$0xff]  ;;  %v287_v1 = vld [vmem:[%s2353_s1 + $0x70] sm:$0xff]  ;;  %vm1057_vm0 = vcmask 31744   ;;  %vm1105_vm1 = vcmask 1043456   ;;  %s1305_s13 = scalar_lea.hbm %s2358_s6, %s1600_s25  ;;  %s270_s7 = scalar_lea.vmem [#allocation5], %s1665_s18 }
  0x2a   : > { %v286_v2 = vld [vmem:[%s2353_s1 + $0x68] sm:$0xff]  ;;  %v1684_v3 = vand.u32 4294901760, %v288_v0  ;;  %v1686_v4 = vand.u32 4294901760, %v287_v1  ;;  %v285_v6 = vld [vmem:[%s2353_s1 + $0x60] sm:$0xff]  ;;  %v284_v7 = vld [vmem:[%s2353_s1 + $0x58] sm:$0xff]  ;;  %s1309_s8 = sshll.u32 %s1305_s13, 4  ;;  %s1310_s8 = int_to_ptr.hbm [resolvable:$true] %s1309_s8 }
  0x2b   : > { %v1688_v5 = vand.u32 4294901760, %v286_v2  ;;  %v283_v8 = vld [vmem:[%s2353_s1 + $0x50] sm:$0xff]  ;;  %v1699_v9 = vand.u32 4294901760, %v285_v6  ;;  %v1701_v10 = vand.u32 4294901760, %v284_v7  ;;  %v282_v12 = vld [vmem:[%s2353_s1 + $0x48] sm:$0xff]  ;;  %v281_v13 = vld [vmem:[%s2353_s1 + $0x40] sm:$0xff] }
  0x2c   : > { %v1703_v11 = vand.u32 4294901760, %v283_v8  ;;  %294 = vmatpush.msra.mxu0 %v1684_v3  ;;  %v1713_v14 = vsub.f32 %v288_v0, %v1684_v3  ;;  %v1716_v15 = vsub.f32 %v287_v1, %v1686_v4  ;;  %v1718_v16 = vand.u32 4294901760, %v282_v12  ;;  %v280_v18 = vld [vmem:[%s2353_s1 + $0x38] sm:$0xff]  ;;  %507 = vmatpush.msra.mxu3 %v1684_v3  ;;  %v279_v25 = vld [vmem:[%s2353_s1 + $0x30] sm:$0xff]  ;;  %v278_v33 = vld [vmem:[%s2353_s1 + $0x28] sm:$0xff]  ;;  %s1297_s14 = scalar_lea.sflag [#allocation4], %s1665_s18 }
  0x2d   : > { %v1721_v17 = vsub.f32 %v286_v2, %v1688_v5  ;;  %v1728_v19 = vsub.f32 %v285_v6, %v1699_v9  ;;  %v1731_v20 = vsub.f32 %v284_v7, %v1701_v10  ;;  %v1737_v24 = vand.u32 4294901760, %v281_v13  ;;  %v277_v40 = vld [vmem:[%s2353_s1 + $0x20] sm:$0xff]  ;;  %v276_v46 = vld [vmem:[%s2353_s1 + $0x18] sm:$0xff]  ;;  %v275_v52 = vld [vmem:[%s2353_s1 + $0x10] sm:$0xff]  ;;  %s1488_s15 = sshra.s32 %s1310_s8, 4  ;;  %s1494_s25 = scalar_lea.hbm %s2358_s6, 2  ;;  %s1489_s15 = int_to_ptr.hbm [resolvable:$true] %s1488_s15 }
  0x2e   : > { %296 = vmatpush.msra.mxu0 %v1686_v4  ;;  %v344_v21 = vand.u32 4294901760, %v1713_v14  ;;  %v350_v22 = vand.u32 4294901760, %v1716_v15  ;;  %449 = vmatpush.msra.mxu2 %v1713_v14  ;;  %v1744_v27 = vand.u32 4294901760, %v280_v18  ;;  %v1748_v29 = vsub.f32 %v283_v8, %v1703_v11  ;;  %v274_v58 = vld [vmem:[%s2353_s1 + $0x8] sm:$0xff]  ;;  %v271_v61 = vld [vmem:[%s1669_s12] sm:$0xff]  ;;  %s1490_s11 = scalar_lea.hbm %s1489_s15, 1  ;;  %p1495_p0 = scmp.lt.s32.totalorder %s1489_s15, %s2358_s6 }
  0x2f   : > { %v356_v23 = vand.u32 4294901760, %v1721_v17  ;;  %v362_v26 = vand.u32 4294901760, %v1728_v19  ;;  %v368_v28 = vand.u32 4294901760, %v1731_v20  ;;  %509 = vmatpush.msra.mxu3 %v1686_v4  ;;  %v1765_v34 = vsub.f32 %v282_v12, %v1718_v16  ;;  %v273_v1 = vld [vmem:[%s2353_s1] sm:$0xff]  ;;  %p1491_p6 = scmp.ne.s32.totalorder %s1489_s15, %s1490_s11  ;;  %p1496_p1 = scmp.lt.s32.totalorder %s1494_s25, %s1490_s11 }
  0x30   : > { %298 = vmatpush.msra.mxu0 %v1688_v5  ;;  %v345_v30 = vsub.f32 %v1713_v14, %v344_v21  ;;  %v351_v31 = vsub.f32 %v1716_v15, %v350_v22  ;;  %v1767_v35 = vand.u32 4294901760, %v279_v25  ;;  %452 = vmatpush.msra.mxu2 %v1716_v15  ;;  %v374_v39 = vand.u32 4294901760, %v1748_v29 }
  0x31   : > { %v357_v32 = vsub.f32 %v1721_v17, %v356_v23  ;;  %511 = vmatpush.msra.mxu3 %v1688_v5  ;;  %v363_v38 = vsub.f32 %v1728_v19, %v362_v26  ;;  %v1779_v41 = vand.u32 4294901760, %v278_v33  ;;  %v1782_v42 = vsub.f32 %v281_v13, %v1737_v24  ;;  %p1492_p9 = pnand %p1491_p6, %p1629_p11  ;;  %p1497_p3 = por %p1496_p1, %p1495_p0 }
  0x32   : > { %300 = vmatpush.msra.mxu0 %v1699_v9  ;;  %v346_v36 = vand.u32 4294901760, %v345_v30  ;;  %v352_v37 = vand.u32 4294901760, %v351_v31  ;;  %455 = vmatpush.msra.mxu2 %v1721_v17  ;;  %v369_v44 = vsub.f32 %v1731_v20, %v368_v28  ;;  %v380_v45 = vand.u32 4294901760, %v1765_v34  ;;  %v272_v31 = vld [vmem:[%s1669_s12 + $0x8] sm:$0xff]  ;;  %s1307_s12 = sshll.u32 %s270_s7, 4  ;;  %s1308_s12 = int_to_ptr.vmem [resolvable:$true] %s1307_s12 }
  0x33   : > { %513 = vmatpush.msra.mxu3 %v1699_v9  ;;  %v358_v43 = vand.u32 4294901760, %v357_v32  ;;  %v1795_v47 = vsub.f32 %v280_v18, %v1744_v27  ;;  %v1797_v48 = vand.u32 4294901760, %v277_v40  ;;  %v364_v49 = vand.u32 4294901760, %v363_v38  ;;  %p1493_p13 = pneg %p1492_p9 }
  0x34   : > { %302 = vmatpush.msra.mxu0 %v1701_v10  ;;  %347 = vmatpush.msra.mxu1 %v346_v36  ;;  %v375_v50 = vsub.f32 %v1748_v29, %v374_v39  ;;  %v386_v51 = vand.u32 4294901760, %v1782_v42  ;;  %v1810_v53 = vsub.f32 %v279_v25, %v1767_v35  ;;  %v1812_v54 = vand.u32 4294901760, %v276_v46 }
  0x35   : > { %458 = vmatpush.msra.mxu2 %v1728_v19  ;;  %515 = vmatpush.msra.mxu3 %v1701_v10  ;;  %v370_v55 = vand.u32 4294901760, %v369_v44  ;;  %v381_v56 = vsub.f32 %v1765_v34, %v380_v45  ;;  %v392_v57 = vand.u32 4294901760, %v1795_v47  ;;  %v1825_v59 = vsub.f32 %v278_v33, %v1779_v41  ;;  %v677_v19 = vld [vmem:[%s2355_s3 + $0x60] sm:$0xff]  ;;  %p1498_p4 = pnand %p1497_p3, %p1493_p13 }
  0x36   : > { %304 = vmatpush.msra.mxu0 %v1703_v11  ;;  %353 = vmatpush.msra.mxu1 %v352_v37  ;;  %v1827_v60 = vand.u32 4294901760, %v275_v52  ;;  %v376_v62 = vand.u32 4294901760, %v375_v50  ;;  %v387_v63 = vsub.f32 %v1782_v42, %v386_v51  ;;  %v398_v0 = vand.u32 4294901760, %v1810_v53 }
  0x37   : > { %461 = vmatpush.msra.mxu2 %v1731_v20  ;;  %517 = vmatpush.msra.mxu3 %v1703_v11  ;;  %v1841_v2 = vsub.f32 %v277_v40, %v1797_v48  ;;  %v1843_v6 = vand.u32 4294901760, %v274_v58  ;;  %v1847_v7 = vsub.f32 %v276_v46, %v1812_v54  ;;  %v382_v8 = vand.u32 4294901760, %v381_v56 }
  0x38   : > { %306 = vmatpush.msra.mxu0 %v1718_v16  ;;  %359 = vmatpush.msra.mxu1 %v358_v43  ;;  %v393_v12 = vsub.f32 %v1795_v47, %v392_v57  ;;  %v404_v13 = vand.u32 4294901760, %v1825_v59  ;;  %v1855_v18 = vand.u32 4294901760, %v271_v61  ;;  %v1857_v25 = vand.u32 4294901760, %v273_v1 }
  0x39   : > { %464 = vmatpush.msra.mxu2 %v1748_v29  ;;  %519 = vmatpush.msra.mxu3 %v1718_v16  ;;  %v1861_v30 = vsub.f32 %v275_v52, %v1827_v60  ;;  %v388_v32 = vand.u32 4294901760, %v387_v63  ;;  %v399_v33 = vsub.f32 %v1810_v53, %v398_v0  ;;  %v410_v36 = vand.u32 4294901760, %v1841_v2 }
  0x3a   : > { %308 = vmatpush.msra.mxu0 %v1737_v24  ;;  %365 = vmatpush.msra.mxu1 %v364_v49  ;;  %v1871_v37 = vsub.f32 %v271_v61, %v1855_v18  ;;  %v416_v38 = vand.u32 4294901760, %v1847_v7  ;;  %v1876_v40 = vsub.f32 %v274_v58, %v1843_v6  ;;  %v394_v43 = vand.u32 4294901760, %v393_v12 }
  0x3b   : > { %467 = vmatpush.msra.mxu2 %v1765_v34  ;;  %521 = vmatpush.msra.mxu3 %v1737_v24  ;;  %v405_v44 = vsub.f32 %v1825_v59, %v404_v13  ;;  %v1886_v49 = vand.u32 4294901760, %v272_v31  ;;  %v400_v50 = vand.u32 4294901760, %v399_v33  ;;  %v411_v52 = vsub.f32 %v1841_v2, %v410_v36 }
  0x3c   : > { %310 = vmatpush.msra.mxu0 %v1744_v27  ;;  %371 = vmatpush.msra.mxu1 %v370_v55  ;;  %v1884_v46 = vand.u32 4294901760, %v1871_v37  ;;  %v422_v55 = vand.u32 4294901760, %v1861_v30  ;;  %v1896_v56 = vsub.f32 %v273_v1, %v1857_v25  ;;  %v428_v58 = vand.u32 4294901760, %v1876_v40 }
  0x3d   : > { %470 = vmatpush.msra.mxu2 %v1782_v42  ;;  %523 = vmatpush.msra.mxu3 %v1744_v27  ;;  %v406_v61 = vand.u32 4294901760, %v405_v44  ;;  %v1908_v1 = vsub.f32 %v272_v31, %v1886_v49 }
  0x3e   : > { %312 = vmatpush.msra.mxu0 %v1767_v35  ;;  %377 = vmatpush.msra.mxu1 %v376_v62  ;;  %v417_v62 = vsub.f32 %v1847_v7, %v416_v38  ;;  %v328_v63 = vsub.f32 %v1871_v37, %v1884_v46  ;;  %v423_v12 = vsub.f32 %v1861_v30, %v422_v55 }
  0x3f   : > { %473 = vmatpush.msra.mxu2 %v1795_v47  ;;  %525 = vmatpush.msra.mxu3 %v1767_v35  ;;  %v429_v33 = vsub.f32 %v1876_v40, %v428_v58  ;;  %v1926_v44 = vand.u32 4294901760, %v1908_v1 }
  0x40   : > { %314 = vmatpush.msra.mxu0 %v1779_v41  ;;  %383 = vmatpush.msra.mxu1 %v382_v8  ;;  %v412_v8 = vand.u32 4294901760, %v411_v52  ;;  %v418_v31 = vand.u32 4294901760, %v417_v62 }
  0x41   : > { %476 = vmatpush.msra.mxu2 %v1810_v53  ;;  %527 = vmatpush.msra.mxu3 %v1779_v41  ;;  %v336_v62 = vsub.f32 %v1908_v1, %v1926_v44 }
  0x42   : > { %316 = vmatpush.msra.mxu0 %v1797_v48  ;;  %389 = vmatpush.msra.mxu1 %v388_v32  ;;  %v434_v32 = vand.u32 4294901760, %v1896_v56 }
  0x43   : > { %479 = vmatpush.msra.mxu2 %v1825_v59  ;;  %529 = vmatpush.msra.mxu3 %v1797_v48  ;;  %v1946_v14 = vand.u32 4294901760, %v336_v62 }
  0x44   : > { %318 = vmatpush.msra.mxu0 %v1812_v54  ;;  %395 = vmatpush.msra.mxu1 %v394_v43  ;;  %v1923_v43 = vand.u32 4294901760, %v328_v63  ;;  %v435_v52 = vsub.f32 %v1896_v56, %v434_v32 }
  0x45   : > { %482 = vmatpush.msra.mxu2 %v1841_v2  ;;  %531 = vmatpush.msra.mxu3 %v1812_v54  ;;  %v673_v2 = vld [vmem:[%s2355_s3 + $0x40] sm:$0xff] }
  0x46   : > { %320 = vmatpush.msra.mxu0 %v1827_v60  ;;  %401 = vmatpush.msra.mxu1 %v400_v50  ;;  %v424_v50 = vand.u32 4294901760, %v423_v12  ;;  %v436_v63 = vand.u32 4294901760, %v435_v52 }
  0x47   : > { %485 = vmatpush.msra.mxu2 %v1847_v7  ;;  %533 = vmatpush.msra.mxu3 %v1827_v60 }
  0x48   : > { %322 = vmatpush.msra.mxu0 %v1843_v6  ;;  %407 = vmatpush.msra.mxu1 %v406_v61  ;;  %v430_v61 = vand.u32 4294901760, %v429_v33 }
  0x49   : > { %488 = vmatpush.msra.mxu2 %v1861_v30  ;;  %535 = vmatpush.msra.mxu3 %v1843_v6  ;;  %v672_v30 = vld [vmem:[%s2355_s3 + $0x38] sm:$0xff] }
  0x4a   : > { %324 = vmatpush.msra.mxu0 %v1857_v25  ;;  %413 = vmatpush.msra.mxu1 %v412_v8 }
  0x4b   : > { %491 = vmatpush.msra.mxu2 %v1876_v40  ;;  %330 = vmatmul.f32.vlgmr.msra.gmra.mxu0 %v1923_v43 }
  0x4c   : > { %554 = vmatpush.msrb.mxu0 %v344_v21  ;;  %419 = vmatpush.msra.mxu1 %v418_v31 }
  0x4d   : > { %494 = vmatpush.msra.mxu2 %v1896_v56  ;;  %537 = vmatpush.msra.mxu3 %v1857_v25  ;;  %v2111_v56 = vand.u32 4294901760, %v672_v30 }
  0x4e   : > { %558 = vmatpush.msrb.mxu0 %v350_v22  ;;  %425 = vmatpush.msra.mxu1 %v424_v50  ;;  %v670_v50 = vld [vmem:[%s2355_s3 + $0x28] sm:$0xff] }
  0x4f   : > { %497 = vmatmul.f32.vlgmr.msra.gmra.mxu2 %v1871_v37  ;;  %541 = vmatmul.f32.vlgmr.msra.gmra.mxu3 %v1884_v46  ;;  %v2127_v33 = vsub.f32 %v672_v30, %v2111_v56  ;;  %v2136_v62 = vand.u32 4294901760, %v670_v50 }
  0x50   : > { %562 = vmatpush.msrb.mxu0 %v356_v23  ;;  %431 = vmatpush.msra.mxu1 %v430_v61  ;;  %v2035_v23 = vand.u32 4294901760, %v677_v19 }
  0x52   : > { %566 = vmatpush.msrb.mxu0 %v362_v26  ;;  %437 = vmatpush.msra.mxu1 %v436_v63  ;;  %v2048_v29 = vsub.f32 %v677_v19, %v2035_v23  ;;  %v2150_v19 = vsub.f32 %v670_v50, %v2136_v62 }
  0x53   : > { %338 = vmatmul.f32.gmra.mxu0 %v1946_v14  ;;  %439 = vmatmul.f32.vlgmr.msra.gmra.mxu1 %v1855_v18 }
  0x54   : > { %570 = vmatpush.msrb.mxu0 %v368_v28  ;;  %625 = vmatpush.msrb.mxu1 %v1684_v3  ;;  %v680_v3 = vld [vmem:[%s2355_s3 + $0x78] sm:$0xff]  ;;  %v754_v42 = vand.u32 4294901760, %v2048_v29 }
  0x56   : > { %574 = vmatpush.msrb.mxu0 %v374_v39  ;;  %627 = vmatpush.msrb.mxu1 %v1686_v4  ;;  %v2000_v4 = vand.u32 4294901760, %v680_v3 }
  0x57   : > { %502 = vmatmul.f32.gmra.mxu2 %v1908_v1  ;;  %547 = vmatmul.f32.gmra.mxu3 %v1926_v44 }
  0x58   : > { %578 = vmatpush.msrb.mxu0 %v380_v45  ;;  %629 = vmatpush.msrb.mxu1 %v1688_v5  ;;  %v679_v5 = vld [vmem:[%s2355_s3 + $0x70] sm:$0xff] }
  0x59   : > { %686 = vmatpush.msrb.mxu2 %v2000_v4 }
  0x5a   : > { %582 = vmatpush.msrb.mxu0 %v386_v51  ;;  %631 = vmatpush.msrb.mxu1 %v1699_v9  ;;  %v2007_v9 = vsub.f32 %v680_v3, %v2000_v4  ;;  %v755_v51 = vsub.f32 %v2048_v29, %v754_v42  ;;  %v784_v3 = vand.u32 4294901760, %v2127_v33 }
  0x5b   : > { %443 = vmatmul.f32.gmra.mxu1 %v1886_v49 }
  0x5c   : > { %586 = vmatpush.msrb.mxu0 %v392_v57  ;;  %633 = vmatpush.msrb.mxu1 %v1701_v10  ;;  %v2009_v10 = vand.u32 4294901760, %v679_v5  ;;  %v736_v15 = vand.u32 4294901760, %v2007_v9 }
  0x5e   : > { %590 = vmatpush.msrb.mxu0 %v398_v0  ;;  %635 = vmatpush.msrb.mxu1 %v1703_v11  ;;  %v678_v11 = vld [vmem:[%s2355_s3 + $0x68] sm:$0xff]  ;;  %v737_v20 = vsub.f32 %v2007_v9, %v736_v15 }
  0x5f   : > { %688 = vmatpush.msrb.mxu2 %v2009_v10  ;;  %v2020_v17 = vand.u32 4294901760, %v678_v11 }
  0x60   : > { %594 = vmatpush.msrb.mxu0 %v404_v13  ;;  %637 = vmatpush.msrb.mxu1 %v1718_v16  ;;  %v2018_v16 = vsub.f32 %v679_v5, %v2009_v10  ;;  %v738_v26 = vand.u32 4294901760, %v737_v20  ;;  %v2095_v13 = vand.u32 4294901760, %v673_v2  ;;  %v669_v5 = vld [vmem:[%s2355_s3 + $0x20] sm:$0xff] }
  0x61   : > { %690 = vmatpush.msrb.mxu2 %v2020_v17  ;;  %v2033_v22 = vsub.f32 %v678_v11, %v2020_v17  ;;  %v2152_v20 = vand.u32 4294901760, %v669_v5 }
  0x62   : > { %598 = vmatpush.msrb.mxu0 %v410_v36  ;;  %639 = vmatpush.msrb.mxu1 %v1737_v24  ;;  %v742_v21 = vand.u32 4294901760, %v2018_v16  ;;  %v676_v24 = vld [vmem:[%s2355_s3 + $0x58] sm:$0xff] }
  0x63   : > { %v748_v28 = vand.u32 4294901760, %v2033_v22  ;;  %692 = vmatpush.msrb.mxu2 %v2035_v23  ;;  %v2051_v34 = vand.u32 4294901760, %v676_v24  ;;  %739 = vmatpush.msrb.mxu3 %v738_v26  ;;  %v785_v26 = vsub.f32 %v2127_v33, %v784_v3 }
  0x64   : > { %602 = vmatpush.msrb.mxu0 %v416_v38  ;;  %641 = vmatpush.msrb.mxu1 %v1744_v27  ;;  %v743_v27 = vsub.f32 %v2018_v16, %v742_v21 }
  0x65   : > { %694 = vmatpush.msrb.mxu2 %v2051_v34  ;;  %v2066_v47 = vsub.f32 %v676_v24, %v2051_v34 }
  0x66   : > { %606 = vmatpush.msrb.mxu0 %v422_v55  ;;  %643 = vmatpush.msrb.mxu1 %v1767_v35  ;;  %v675_v35 = vld [vmem:[%s2355_s3 + $0x50] sm:$0xff]  ;;  %v744_v39 = vand.u32 4294901760, %v743_v27  ;;  %v2109_v55 = vsub.f32 %v673_v2, %v2095_v13  ;;  %v668_v27 = vld [vmem:[%s2355_s3 + $0x18] sm:$0xff] }
  0x67   : > { %v2061_v45 = vand.u32 4294901760, %v675_v35  ;;  %v760_v57 = vand.u32 4294901760, %v2066_v47 }
  0x68   : > { %610 = vmatpush.msrb.mxu0 %v428_v58  ;;  %645 = vmatpush.msrb.mxu1 %v1779_v41  ;;  %v749_v41 = vsub.f32 %v2033_v22, %v748_v28  ;;  %v671_v58 = vld [vmem:[%s2355_s3 + $0x30] sm:$0xff]  ;;  %v778_v31 = vand.u32 4294901760, %v2109_v55 }
  0x69   : > { %745 = vmatpush.msrb.mxu3 %v744_v39  ;;  %v2073_v53 = vsub.f32 %v675_v35, %v2061_v45  ;;  %696 = vmatpush.msrb.mxu2 %v2061_v45  ;;  %v2120_v12 = vand.u32 4294901760, %v671_v58  ;;  %v2361_v39 = vand.u32 4294901760, %v2150_v19 }
  0x6a   : > { %614 = vmatpush.msrb.mxu0 %v434_v32  ;;  %647 = vmatpush.msrb.mxu1 %v1797_v48  ;;  %v750_v48 = vand.u32 4294901760, %v749_v41  ;;  %v779_v63 = vsub.f32 %v2109_v55, %v778_v31  ;;  %v2168_v41 = vsub.f32 %v669_v5, %v2152_v20 }
  0x6b   : > { %616 = vmatmul.f32.vlgmr.msrb.gmra.mxu0 %v1855_v18  ;;  %v766_v0 = vand.u32 4294901760, %v2073_v53  ;;  %v2134_v61 = vsub.f32 %v671_v58, %v2120_v12 }
  0x6c   : > { %649 = vmatpush.msrb.mxu1 %v1812_v54  ;;  %841 = vmatpush.msra.mxu0 %v2007_v9  ;;  %v674_v54 = vld [vmem:[%s2355_s3 + $0x48] sm:$0xff]  ;;  %v780_v24 = vand.u32 4294901760, %v779_v63 }
  0x6d   : > { %v2080_v59 = vand.u32 4294901760, %v674_v54  ;;  %751 = vmatpush.msrb.mxu3 %v750_v48  ;;  %v2363_v11 = vand.u32 4294901760, %v2134_v61 }
  0x6e   : > { %651 = vmatpush.msrb.mxu1 %v1827_v60  ;;  %844 = vmatpush.msra.mxu0 %v2018_v16  ;;  %v756_v60 = vand.u32 4294901760, %v755_v51  ;;  %v786_v51 = vand.u32 4294901760, %v785_v26 }
  0x6f   : > { %698 = vmatpush.msrb.mxu2 %v2080_v59  ;;  %v2093_v7 = vsub.f32 %v674_v54, %v2080_v59  ;;  %v791_v35 = vsub.f32 %v2134_v61, %v2363_v11  ;;  %v2174_v54 = vand.u32 4294901760, %v668_v27 }
  0x70   : > { %653 = vmatpush.msrb.mxu1 %v1843_v6  ;;  %847 = vmatpush.msra.mxu0 %v2033_v22  ;;  %v761_v6 = vsub.f32 %v2066_v47, %v760_v57 }
  0x71   : > { %757 = vmatpush.msrb.mxu3 %v756_v60  ;;  %v772_v38 = vand.u32 4294901760, %v2093_v7  ;;  %700 = vmatpush.msrb.mxu2 %v2095_v13  ;;  %v667_v60 = vld [vmem:[%s2355_s3 + $0x10] sm:$0xff]  ;;  %v792_v2 = vand.u32 4294901760, %v791_v35  ;;  %v2187_v30 = vsub.f32 %v668_v27, %v2174_v54 }
  0x72   : > { %655 = vmatpush.msrb.mxu1 %v1857_v25  ;;  %850 = vmatpush.msra.mxu0 %v2048_v29  ;;  %v767_v25 = vsub.f32 %v2073_v53, %v766_v0  ;;  %v762_v36 = vand.u32 4294901760, %v761_v6  ;;  %v797_v6 = vsub.f32 %v2150_v19, %v2361_v39 }
  0x73   : > { %620 = vmatmul.f32.gmra.mxu0 %v1886_v49  ;;  %657 = vmatmul.f32.vlgmr.msrb.gmra.mxu1 %v1855_v18  ;;  %v773_v8 = vsub.f32 %v2093_v7, %v772_v38  ;;  %v2359_v63 = vand.u32 4294901760, %v2187_v30 }
  0x74   : > { %899 = vmatpush.msra.mxu1 %v2000_v4  ;;  %853 = vmatpush.msra.mxu0 %v2066_v47  ;;  %v768_v40 = vand.u32 4294901760, %v767_v25  ;;  %v2360_v25 = vand.u32 4294901760, %v2168_v41  ;;  %v798_v58 = vand.u32 4294901760, %v797_v6 }
  0x75   : > { %763 = vmatpush.msrb.mxu3 %v762_v36  ;;  %702 = vmatpush.msrb.mxu2 %v2111_v56  ;;  %v774_v52 = vand.u32 4294901760, %v773_v8  ;;  %v2189_v36 = vand.u32 4294901760, %v667_v60 }
  0x76   : > { %901 = vmatpush.msra.mxu1 %v2009_v10  ;;  %856 = vmatpush.msra.mxu0 %v2073_v53  ;;  %v803_v8 = vsub.f32 %v2168_v41, %v2360_v25  ;;  %v2370_v53 = vand.u32 4294901760, %v2150_v19 }
  0x77   : > { %769 = vmatpush.msrb.mxu3 %v768_v40  ;;  %704 = vmatpush.msrb.mxu2 %v2120_v12  ;;  %v666_v40 = vld [vmem:[%s2355_s3 + $0x8] sm:$0xff]  ;;  %v2204_v5 = vsub.f32 %v667_v60, %v2189_v36 }
  0x78   : > { %903 = vmatpush.msra.mxu1 %v2020_v17  ;;  %859 = vmatpush.msra.mxu0 %v2093_v7  ;;  %v2197_v50 = vand.u32 4294901760, %v666_v40  ;;  %v804_v26 = vand.u32 4294901760, %v803_v8  ;;  %v2372_v7 = vand.u32 4294901760, %v2187_v30 }
  0x79   : > { %775 = vmatpush.msrb.mxu3 %v774_v52  ;;  %706 = vmatpush.msrb.mxu2 %v2136_v62  ;;  %v2362_v60 = vand.u32 4294901760, %v2204_v5 }
  0x7a   : > { %905 = vmatpush.msra.mxu1 %v2035_v23  ;;  %862 = vmatpush.msra.mxu0 %v2109_v55  ;;  %v2210_v27 = vsub.f32 %v666_v40, %v2197_v50 }
  0x7b   : > { %661 = vmatmul.f32.gmra.mxu1 %v1886_v49  ;;  %781 = vmatpush.msrb.mxu3 %v780_v24  ;;  %v665_v24 = vld [vmem:[%s2355_s3] sm:$0xff] }
  0x7c   : > { %907 = vmatpush.msra.mxu1 %v2051_v34  ;;  %865 = vmatpush.msra.mxu0 %v2127_v33  ;;  %v2212_v35 = vand.u32 4294901760, %v665_v24  ;;  %v820_v6 = vand.u32 4294901760, %v2210_v27 }
  0x7d   : > { %708 = vmatpush.msrb.mxu2 %v2152_v20  ;;  %787 = vmatpush.msrb.mxu3 %v786_v51  ;;  %v809_v51 = vsub.f32 %v2187_v30, %v2359_v63  ;;  %v815_v63 = vsub.f32 %v2204_v5, %v2362_v60 }
  0x7e   : > { %909 = vmatpush.msra.mxu1 %v2061_v45  ;;  %868 = vmatpush.msra.mxu0 %v2134_v61  ;;  %v2226_v40 = vsub.f32 %v665_v24, %v2212_v35  ;;  %v821_v25 = vsub.f32 %v2210_v27, %v820_v6 }
  0x7f   : > { %710 = vmatpush.msrb.mxu2 %v2174_v54  ;;  %793 = vmatpush.msrb.mxu3 %v792_v2  ;;  %v1436_v2 = vld [vmem:[%s2354_s2] ss:$0 sm:$0xff]  ;;  %v810_v8 = vand.u32 4294901760, %v809_v51 }
  0x80   : > { %911 = vmatpush.msra.mxu1 %v2080_v59  ;;  %871 = vmatpush.msra.mxu0 %v2150_v19  ;;  %v826_v24 = vand.u32 4294901760, %v2226_v40  ;;  %v822_v60 = vand.u32 4294901760, %v821_v25 }
  0x81   : > { %712 = vmatpush.msrb.mxu2 %v2189_v36  ;;  %799 = vmatpush.msrb.mxu3 %v798_v58 }
  0x82   : > { %913 = vmatpush.msra.mxu1 %v2095_v13  ;;  %874 = vmatpush.msra.mxu0 %v2168_v41  ;;  %v827_v11 = vsub.f32 %v2226_v40, %v826_v24 }
  0x83   : > { %714 = vmatpush.msrb.mxu2 %v2197_v50  ;;  %805 = vmatpush.msrb.mxu3 %v804_v26  ;;  %v816_v26 = vand.u32 4294901760, %v815_v63 }
  0x84   : > { %915 = vmatpush.msra.mxu1 %v2111_v56  ;;  %877 = vmatpush.msra.mxu0 %v2187_v30  ;;  %v828_v63 = vand.u32 4294901760, %v827_v11 }
  0x85   : > { %716 = vmatpush.msrb.mxu2 %v2212_v35  ;;  %811 = vmatpush.msrb.mxu3 %v810_v8 }
  0x86   : > { %917 = vmatpush.msra.mxu1 %v2120_v12  ;;  %880 = vmatpush.msra.mxu0 %v2204_v5 }
  0x87   : > { %946 = vmatpush.msra.mxu2 %v736_v15  ;;  %817 = vmatpush.msrb.mxu3 %v816_v26 }
  0x88   : > { %919 = vmatpush.msra.mxu1 %v2136_v62  ;;  %883 = vmatpush.msra.mxu0 %v2210_v27 }
  0x89   : > { %722 = vmatmul.f32.vlgmr.msrb.gmra.mxu2 %v1923_v43  ;;  %823 = vmatpush.msrb.mxu3 %v822_v60 }
  0x8a   : > { %921 = vmatpush.msra.mxu1 %v2152_v20  ;;  %950 = vmatpush.msra.mxu2 %v742_v21 }
  0x8b   : > { %886 = vmatpush.msra.mxu0 %v2226_v40  ;;  %829 = vmatpush.msrb.mxu3 %v828_v63 }
  0x8c   : > { %923 = vmatpush.msra.mxu1 %v2174_v54  ;;  %954 = vmatpush.msra.mxu2 %v748_v28 }
  0x8d   : > { %889 = vmatmul.f32.vlgmr.msra.gmra.mxu0 %v1871_v37  ;;  %1017 = vmatpush.msra.mxu3 %v2000_v4 }
  0x8e   : > { %925 = vmatpush.msra.mxu1 %v2189_v36  ;;  %958 = vmatpush.msra.mxu2 %v754_v42 }
  0x8f   : > { %831 = vmatmul.f32.vlgmr.msrb.gmra.mxu3 %v1855_v18 }
  0x90   : > { %927 = vmatpush.msra.mxu1 %v2197_v50  ;;  %962 = vmatpush.msra.mxu2 %v760_v57 }
  0x91   : > { %730 = vmatmul.f32.gmra.mxu2 %v1946_v14  ;;  %1019 = vmatpush.msra.mxu3 %v2009_v10 }
  0x92   : > { %929 = vmatpush.msra.mxu1 %v2212_v35  ;;  %966 = vmatpush.msra.mxu2 %v766_v0  ;;  %v2371_v0 = vand.u32 4294901760, %v2168_v41 }
  0x93   : > { %933 = vmatmul.f32.vlgmr.msra.gmra.mxu1 %v1884_v46  ;;  %1021 = vmatpush.msra.mxu3 %v2020_v17 }
  0x94   : > { %970 = vmatpush.msra.mxu2 %v772_v38 }
  0x95   : > { %894 = vmatmul.f32.gmra.mxu0 %v1908_v1  ;;  %1023 = vmatpush.msra.mxu3 %v2035_v23  ;;  %v2369_v1 = vand.u32 4294901760, %v2134_v61 }
  0x96   : > { %974 = vmatpush.msra.mxu2 %v778_v31 }
  0x97   : > { %1025 = vmatpush.msra.mxu3 %v2051_v34 }
  0x98   : > { %978 = vmatpush.msra.mxu2 %v784_v3  ;;  %835 = vmatmul.f32.gmra.mxu3 %v1886_v49 }
  0x99   : > { %1027 = vmatpush.msra.mxu3 %v2061_v45 }
  0x9a   : > { %982 = vmatpush.msra.mxu2 %v2369_v1 }
  0x9b   : > { %939 = vmatmul.f32.gmra.mxu1 %v1926_v44  ;;  %1029 = vmatpush.msra.mxu3 %v2080_v59  ;;  %v2373_v59 = vand.u32 4294901760, %v2204_v5 }
  0x9c   : > { %986 = vmatpush.msra.mxu2 %v2370_v53 }
  0x9d   : > { %1031 = vmatpush.msra.mxu3 %v2095_v13 }
  0x9e   : > { %990 = vmatpush.msra.mxu2 %v2371_v0 }
  0x9f   : > { %1033 = vmatpush.msra.mxu3 %v2111_v56 }
  0xa0   : > { %994 = vmatpush.msra.mxu2 %v2372_v7 }
  0xa1   : > { %1035 = vmatpush.msra.mxu3 %v2120_v12  ;;  %v1098_v12 = vld [vmem:[%s2357_s5] sm:$0xf] }
  0xa2   : > { %998 = vmatpush.msra.mxu2 %v2373_v59  ;;  %v1107_v31 = vsel %vm1105_vm1, %v1098_v12, 0 }
  0xa3   : > { %1037 = vmatpush.msra.mxu3 %v2136_v62  ;;  %v1124_v33 = vand.u32 4294901760, %v1107_v31 }
  0xa4   : > { %1002 = vmatpush.msra.mxu2 %v820_v6 }
  0xa5   : > { %1039 = vmatpush.msra.mxu3 %v2152_v20  ;;  %v1159_v62 = vsub.f32 %v1107_v31, %v1124_v33  ;;  %1125 = vmatpush.msrb.mxu0 %v1124_v33 }
  0xa6   : > { %1006 = vmatpush.msra.mxu2 %v826_v24 }
  0xa7   : > { %1008 = vmatmul.f32.vlgmr.msra.gmra.mxu2 %v1855_v18  ;;  %1041 = vmatpush.msra.mxu3 %v2174_v54  ;;  %v1160_v19 = vand.u32 4294901760, %v1159_v62 }
  0xa8   : > { %1386 = vmatpush.msrb.mxu2 %v1124_v33 }
  0xa9   : > { %1043 = vmatpush.msra.mxu3 %v2189_v36  ;;  %v1161_v41 = vsub.f32 %v1159_v62, %v1160_v19  ;;  %1250 = vmatpush.msra.mxu0 %v1160_v19 }
  0xaa   : > { %1190 = vmatpush.msra.mxu2 %v1159_v62 }
  0xab   : > { %1045 = vmatpush.msra.mxu3 %v2197_v50 }
  0xad   : > { %1047 = vmatpush.msra.mxu3 %v2212_v35 }
  0xae   : > { %1049 = vmatmul.f32.vlgmr.msra.gmra.mxu3 %v1855_v18 }
  0xaf   : > { %1012 = vmatmul.f32.gmra.mxu2 %v1886_v49 }
  0xb6   : > { %1053 = vmatmul.f32.gmra.mxu3 %v1886_v49 }
  0xc8   : > { %v2122_v32 = vpop.f32.mrf.mxu0 }
  0xc9   : > { %v332_v51 = vadd.f32 %v1436_v2, %v2122_v32 }
  0xd0   : > { %v2171_v48 = vpop.f32.mrf.mxu1  ;;  %v339_v52 = vpop.f32.mrf.mxu0 }
  0xd1   : > { %v340_v15 = vadd.f32 %v1436_v2, %v339_v52  ;;  %v441_v16 = vadd.f32 %v2171_v48, %v332_v51  ;;  %v1162_v48 = vand.u32 4294901760, %v1161_v41 }
  0xd2   : > { %v498_v58 = vpop.f32.mrf.mxu2  ;;  %v542_v9 = vpop.f32.mrf.mxu3 }
  0xd3   : > { %v499_v22 = vadd.f32 %v498_v58, %v441_v16  ;;  %1387 = vmatpush.msrb.mxu3 %v1162_v48  ;;  %1163 = vmatpush.msrb.mxu1 %v1162_v48 }
  0xd5   : > { %v543_v29 = vadd.f32 %v542_v9, %v499_v22  ;;  %1218 = vmatpush.msra.mxu3 %v1124_v33  ;;  %1276 = vmatpush.msra.mxu1 %v1124_v33 }
  0xd8   : > { %v444_v39 = vpop.f32.mrf.mxu1 }
  0xd9   : > { %v445_v21 = vadd.f32 %v444_v39, %v340_v15 }
  0xda   : > { %v503_v46 = vpop.f32.mrf.mxu2  ;;  %v548_v4 = vpop.f32.mrf.mxu3 }
  0xdb   : > { %v504_v28 = vadd.f32 %v503_v46, %v445_v21 }
  0xdd   : > { %v549_v42 = vadd.f32 %v548_v4, %v504_v28 }
  0xe8   : > { %v617_v43 = vpop.f32.mrf.mxu0 }
  0xe9   : > { %v618_v10 = vadd.f32 %v617_v43, %v543_v29 }
  0xf0   : > { %v658_v37 = vpop.f32.mrf.mxu1  ;;  %v621_v14 = vpop.f32.mrf.mxu0 }
  0xf1   : > { %v622_v44 = vadd.f32 %v621_v14, %v549_v42  ;;  %v659_v17 = vadd.f32 %v658_v37, %v618_v10 }
  0xf3   : > { %v1058_v34 = vsel %vm1057_vm0, %v659_v17, -inf }
  0xf8   : > { %v662_v23 = vpop.f32.mrf.mxu1 }
  0xf9   : > { %v663_v47 = vadd.f32 %v662_v23, %v622_v44 }
  0xfb   : > { %v1059_v57 = vsel %vm1057_vm0, %v663_v47, -inf }
  0xfc   : > { %v1060_v45 = vmax.f32 %v1058_v34, %v1059_v57 }
  0xfe   : > { %v1061_v38 = vrot.slane %v1060_v45, 4 }
 0x100   : > { %v1062_v55 = vmax.f32 %v1060_v45, %v1061_v38 }
 0x102   : > { %v1063_v13 = vrot.slane %v1062_v55, 2 }
 0x104   : > { %v1064_v56 = vmax.f32 %v1062_v55, %v1063_v13  ;;  %v1437_v55 = vld [vmem:[%s2356_s4] ss:$0 sm:$0xff] }
 0x106   : > { %v1065_v32 = vrot.slane %v1064_v56, 1 }
 0x108   : > { %v1066_v61 = vmax.f32 %v1064_v56, %v1065_v32 }
 0x10a   : > { %v1067_v3 = vsub.f32 %v659_v17, %v1066_v61  ;;  %v1068_v11 = vsub.f32 %v663_v47, %v1066_v61  ;;  %v890_v34 = vpop.f32.mrf.mxu0 }
 0x10c   : > { %v1069_v20 = vmul.f32 1.442695, %v1067_v3  ;;  %v1071_v39 = vmul.f32 1.442695, %v1068_v11  ;;  %v723_v17 = vpop.f32.mrf.mxu2 }
 0x10d   : > { %v724_v32 = vadd.f32 %v1437_v55, %v723_v17 }
 0x10e   : > { %1438 = vpow2.f32 %v1069_v20 }
 0x10f   : > { %1440 = vpow2.f32 %v1071_v39 }
 0x110   : > { %v934_v53 = vpop.f32.mrf.mxu1 }
 0x112   : > { %v832_v44 = vpop.f32.mrf.mxu3  ;;  %v895_v7 = vpop.f32.mrf.mxu0 }
 0x113   : > { %v833_v33 = vadd.f32 %v832_v44, %v724_v32 }
 0x114   : > { %v1439_v54 = vpop.eup %1438  ;;  %v731_v23 = vpop.f32.mrf.mxu2 }
 0x115   : > { %v1441_v25 = vpop.eup %1440  ;;  %v1073_v30 = vsel %vm1057_vm0, %v1439_v54, 0.0  ;;  %v732_v31 = vadd.f32 %v1437_v55, %v731_v23  ;;  %v891_v39 = vadd.f32 %v890_v34, %v833_v33 }
 0x116   : > { %v1074_v36 = vsel %vm1057_vm0, %v1441_v25, 0.0 }
 0x117   : > { %v1075_v18 = vadd.f32 %v1074_v36, %v1073_v30 }
 0x118   : > { %v940_v45 = vpop.f32.mrf.mxu1 }
 0x119   : > { %v1076_v50 = vrot.slane %v1075_v18, 4 }
 0x11b   : > { %v1077_v52 = vadd.f32 %v1076_v50, %v1075_v18  ;;  %v836_v1 = vpop.f32.mrf.mxu3 }
 0x11c   : > { %v837_v61 = vadd.f32 %v836_v1, %v732_v31 }
 0x11d   : > { %v1078_v5 = vrot.slane %v1077_v52, 2 }
 0x11e   : > { %v896_v41 = vadd.f32 %v895_v7, %v837_v61 }
 0x11f   : > { %v1079_v27 = vadd.f32 %v1078_v5, %v1077_v52 }
 0x120   : > { %v941_v30 = vadd.f32 %v940_v45, %v896_v41 }
 0x121   : > { %v1080_v35 = vrot.slane %v1079_v27, 1 }
 0x123   : > { %v1081_v60 = vadd.f32 %v1080_v35, %v1079_v27 }
 0x125   : > { %1442 = vrcp.f32 %v1081_v60  ;;  %v1093_v58 = vand.u32 2147483648, %v1081_v60  ;;  %v1091_v49 = vand.u32 2147483647, %v1081_v60  ;;  %vm1087_vm3 = vweird.f32 %v1081_v60 }
 0x127   : > { %v1094_v26 = vor.u32 1.1754944e-38, %v1093_v58  ;;  %vm1092_vm5 = vcmp.eq.f32.partialorder %v1091_v49, 8.507059e+37 }
 0x12a   : > { %v1009_v57 = vpop.f32.mrf.mxu2 }
 0x12b   : > { %v1443_v2 = vpop.eup %1442 }
 0x12c   : > { %v1083_v6 = vmul.f32 %v1443_v2, %v1081_v60  ;;  %vm1088_vm2 = vweird.f32 %v1443_v2 }
 0x12d   : > { %vm1089_vm4 = vmor %vm1087_vm3, %vm1088_vm2 }
 0x12e   : > { %v1084_v40 = vsub.f32 1.0, %v1083_v6 }
 0x130   : > { %v1085_v8 = vmul.f32 %v1443_v2, %v1084_v40 }
 0x131   : > { %v1050_v47 = vpop.f32.mrf.mxu3 }
 0x132   : > { %v1086_v24 = vadd.f32 %v1443_v2, %v1085_v8  ;;  %v1013_v38 = vpop.f32.mrf.mxu2 }
 0x133   : > { %v1014_v35 = vadd.f32 %v1013_v38, %v941_v30 }
 0x134   : > { %v1090_v51 = vsel %vm1089_vm4, %v1443_v2, %v1086_v24 }
 0x135   : > { %v1095_v9 = vsel %vm1092_vm5, %v1094_v26, %v1090_v51 }
 0x136   : > { %v1096_v15 = vmul.f32 %v1439_v54, %v1095_v9  ;;  %v1097_v63 = vmul.f32 %v1441_v25, %v1095_v9  ;;  %v935_v25 = vadd.f32 %v934_v53, %v891_v39 }
 0x138   : > { %v1100_v43 = vsel %vm1057_vm0, %v1096_v15, 0  ;;  %v1103_v16 = vsel %vm1057_vm0, %v1097_v63, 0  ;;  %v1010_v27 = vadd.f32 %v1009_v57, %v935_v25 }
 0x139   : > { %v1126_v21 = vand.u32 4294901760, %v1100_v43  ;;  %v1134_v46 = vand.u32 4294901760, %v1103_v16  ;;  %v1054_v0 = vpop.f32.mrf.mxu3 }
 0x13a   : > { %v1051_v8 = vadd.f32 %v1050_v47, %v1010_v27  ;;  %v1055_v49 = vadd.f32 %v1054_v0, %v1014_v35 }
 0x13b   : > { %v1127_v22 = vsub.f32 %v1100_v43, %v1126_v21  ;;  %1165 = vmatmul.f32.vlgmr.msrb.gmra.mxu1 %v1126_v21  ;;  %v1135_v37 = vsub.f32 %v1103_v16, %v1134_v46  ;;  %1169 = vmatmul.f32.vlgmr.msrb.gmra.mxu3 %v1134_v46 }
 0x13d   : > { %v1128_v28 = vand.u32 4294901760, %v1127_v22  ;;  %v1136_v4 = vand.u32 4294901760, %v1135_v37 }
 0x13f   : > { %v1129_v29 = vsub.f32 %v1127_v22, %v1128_v28  ;;  %v1137_v14 = vsub.f32 %v1135_v37, %v1136_v4 }
 0x141   : > { %v1130_v10 = vand.u32 4294901760, %v1129_v29  ;;  %v1138_v42 = vand.u32 4294901760, %v1137_v14 }
 0x143   : > { %1131 = vmatmul.f32.vlgmr.msrb.gmra.mxu0 %v1130_v10  ;;  %1139 = vmatmul.f32.vlgmr.msrb.gmra.mxu2 %v1138_v42 }
 0x144   : > { %1222 = vmatmul.f32.vlgmr.msra.gmra.mxu3 %v1128_v28  ;;  %1278 = vmatmul.f32.vlgmr.msra.gmra.mxu1 %v1126_v21 }
 0x14b   : > { %1193 = vmatmul.f32.vlgmr.msra.gmra.mxu2 %v1127_v22  ;;  %1252 = vmatmul.f32.vlgmr.msra.gmra.mxu0 %v1126_v21 }
 0x14c   : > { %1228 = vmatmul.f32.gmra.mxu3 %v1136_v4  ;;  %1282 = vmatmul.f32.gmra.mxu1 %v1134_v46 }
 0x153   : > { %1198 = vmatmul.f32.gmra.mxu2 %v1135_v37  ;;  %1256 = vmatmul.f32.gmra.mxu0 %v1134_v46 }
 0x1b8   : > { %v1166_v12 = vpop.f32.mrf.mxu1 }
 0x1be   : > { %v1170_v59 = vpop.f32.mrf.mxu3 }
 0x1c0   : > { %v1132_v13 = vpop.f32.mrf.mxu0 }
 0x1c1   : > { %v1167_v62 = vadd.f32 %v1166_v12, %v1132_v13  ;;  %v1279_v48 = vpop.f32.mrf.mxu1 }
 0x1c6   : > { %v1140_v56 = vpop.f32.mrf.mxu2 }
 0x1c7   : > { %v1223_v3 = vpop.f32.mrf.mxu3  ;;  %v1171_v36 = vadd.f32 %v1170_v59, %v1140_v56 }
 0x1c8   : > { %v1253_v20 = vpop.f32.mrf.mxu0 }
 0x1c9   : > { %v1283_v58 = vpop.f32.mrf.mxu1 }
 0x1ce   : > { %v1194_v11 = vpop.f32.mrf.mxu2 }
 0x1cf   : > { %v1195_v19 = vadd.f32 %v1194_v11, %v1167_v62  ;;  %v1229_v5 = vpop.f32.mrf.mxu3 }
 0x1d0   : > { %v1257_v2 = vpop.f32.mrf.mxu0 }
 0x1d1   : > { %v1224_v54 = vadd.f32 %v1223_v3, %v1195_v19 }
 0x1d3   : > { %v1254_v50 = vadd.f32 %v1253_v20, %v1224_v54 }
 0x1d5   : > { %v1280_v6 = vadd.f32 %v1279_v48, %v1254_v50 }
 0x1d6   : > { %v1199_v18 = vpop.f32.mrf.mxu2 }
 0x1d7   : > { %v1200_v52 = vadd.f32 %v1199_v18, %v1171_v36  ;;  %v1286_v26 = vmul.f32 %v1280_v6, %v1051_v8 }
 0x1d9   : > { %v1230_v60 = vadd.f32 %v1229_v5, %v1200_v52 }
 0x1db   : > { %v1258_v40 = vadd.f32 %v1257_v2, %v1230_v60 }
 0x1dd   : > { %v1284_v24 = vadd.f32 %v1283_v58, %v1258_v40 }
 0x1df   : > { %v1287_v51 = vmul.f32 %v1284_v24, %v1055_v49 }
 0x1e1   : > { %v1288_v9 = vadd.f32 %v1287_v51, %v1286_v26 }
 0x1e3   : > { %v1289_v15 = vrot.slane %v1288_v9, 4 }
 0x1e5   : > { %v1290_v63 = vadd.f32 %v1289_v15, %v1288_v9 }
 0x1e7   : > { %v1291_v43 = vrot.slane %v1290_v63, 2 }
 0x1e9   : > { %v1292_v16 = vadd.f32 %v1291_v43, %v1290_v63 }
 0x1eb   : > { %v1293_v21 = vrot.slane %v1292_v16, 1 }
 0x1ed   : > { %v1294_v46 = vadd.f32 %v1293_v21, %v1292_v16 }
 0x1ef   : > { %1295 = vst [vmem:[%s270_s7] sm:$0x1] %v1294_v46 }
 0x1f0   : > { %1501 = shalt.err (!%p1498_p4)
}
 0x1f1   : > { %1390 = dma.vmem_to_hbm [thread:$0]  (%p1629_p11), %s1308_s12, 16, %s1310_s8, %s1297_s14  }
 0x1f2 PF: > { %s1321_s18 = sand.u32 1, %s1528_s21   ;;  %p2374_p7 = scmp.ge.s32.totalorder %s1540_s24, 2 }
 0x1f3   : > { %s1322_s19 = scalar_lea.sflag [#allocation4], %s1321_s18 }
 0x1f4   : > { %p1397_p5 = pnand %p2374_p7, %p1633_p12 }
 0x1f6   : > { %p1398_p8 = pneg %p1397_p5 }
 0x1f8   : > { %1523 = dma.done.wait (%p1398_p8), %s1322_s19, 16  }
 0x1f9   : > { %1525 = vsyncadd (%p1398_p8), %s1322_s19, 4294967280  ;;  %p19_p10 = scmp.ge.s32.totalorder %s1604_s27, 4   ;;  %s2375_s21 = smov %s1532_s22 }
 0x1fa   : > { %s2376_s22 = smov %s1536_s23  ;;  %s2377_s23 = smov %s1616_s30 }
 0x1fb   : > { %s2378_s24 = smov %s1604_s27  ;;  %21 = sbr.rel (!%p19_p10) target bundleno = 5 (0x5), region = 89 }
 0x200   :  { %1327 = vsyncpa [#allocation3], 1 }
 0x201   :  { %1329 = vsyncpa [#allocation3 + $0x1], 1 }
 0x202   :  { %1330 = vsyncpa [#allocation4], 1 }
 0x203   :  { %1332 = vsyncpa [#allocation4 + $0x1], 1 }

</bundles_post_ra>
